<compile_context>
chip_gen: v5e
topology: v5e:2x2
jax: 0.10.0
libtpu: 0.0.40
codegen_flags: <defaults>
</compile_context>

<pallas_src>
import functools

import jax
import jax.numpy as jnp
from jax.experimental import pallas as pl
from jax.experimental.pallas import tpu as pltpu

IN_F = 28 * 28          # 784
H1, H1P = 500, 512      # fc1 out, lane-padded
H2 = 256                # fc2 out (already a multiple of 128)
NC, NCP = 10, 128       # fc3 out (num classes), lane-padded


def _sigmoid(x):
    # Plain exp + divide: lowers cleanly in-kernel and matches the reference exactly.
    return 1.0 / (1.0 + jnp.exp(-x))


def mlp_kernel(x_ref, w1_ref, b1_ref, w2_ref, b2_ref, w3_ref, b3_ref,
               t1_ref, t2_ref, t3_ref, t4_ref, t5_ref, t6_ref):
    # x tile: (TB, 784) f32 -> bf16 for the MXU; accumulate in f32.
    x = x_ref[...].astype(jnp.bfloat16)

    # fc1: (TB, 784) @ (784, 512) + (1, 512)   (cols 500..511 are zero-padded)
    t1 = jnp.dot(x, w1_ref[...], preferred_element_type=jnp.float32) + b1_ref[...]
    t1_ref[...] = t1
    t2 = _sigmoid(t1)
    t2_ref[...] = t2

    # fc2: (TB, 512) @ (512, 256) + (1, 256)   (padded rows of w2 are zero)
    t3 = jnp.dot(t2.astype(jnp.bfloat16), w2_ref[...],
                 preferred_element_type=jnp.float32) + b2_ref[...]
    t3_ref[...] = t3
    t4 = _sigmoid(t3)
    t4_ref[...] = t4

    # fc3: (TB, 256) @ (256, 128) + (1, 128)   (cols 10..127 are zero-padded)
    t5 = jnp.dot(t4.astype(jnp.bfloat16), w3_ref[...],
                 preferred_element_type=jnp.float32) + b3_ref[...]
    t5_ref[...] = t5

    # Softmax over the 10 real classes only (mask out the padded lanes).
    col = jax.lax.broadcasted_iota(jnp.int32, t5.shape, 1)
    logits = jnp.where(col < NC, t5, jnp.float32(-1e30))
    m = jnp.max(logits, axis=-1, keepdims=True)
    e = jnp.exp(logits - m)
    denom = jnp.sum(e, axis=-1, keepdims=True)
    t6_ref[...] = e * pl.reciprocal(denom, approx=True)


def prepare_params(w1, b1, w2, b2, w3, b3):
    """One-time preprocessing: transpose (out,in)->(in,out), lane-pad, cast to bf16.

    Biases are kept in f32 (added after f32 MXU accumulation).
    """
    w1t = jnp.zeros((IN_F, H1P), jnp.bfloat16).at[:, :H1].set(w1.T.astype(jnp.bfloat16))
    b1p = jnp.zeros((1, H1P), jnp.float32).at[:, :H1].set(b1.astype(jnp.float32))
    w2t = jnp.zeros((H1P, H2), jnp.bfloat16).at[:H1, :].set(w2.T.astype(jnp.bfloat16))
    b2p = b2.astype(jnp.float32)[None, :]
    w3t = jnp.zeros((H2, NCP), jnp.bfloat16).at[:, :NC].set(w3.T.astype(jnp.bfloat16))
    b3p = jnp.zeros((1, NCP), jnp.float32).at[:, :NC].set(b3.astype(jnp.float32))
    return (w1t, b1p, w2t, b2p, w3t, b3p)


@functools.partial(jax.jit, static_argnames=("block_b",))
def mlp_sigmoid_parsing(x, params, block_b=256):
    """x: (B, 784) f32. params: output of prepare_params. Returns (t1..t6)."""
    w1t, b1p, w2t, b2p, w3t, b3p = params
    B = x.shape[0]
    TB = min(block_b, B)
    grid = (pl.cdiv(B, TB),)

    const = lambda i: (0, 0)       # weights / biases: resident in VMEM across the grid
    tiled = lambda i: (i, 0)       # x / outputs: one batch tile per grid step

    in_specs = [
        pl.BlockSpec((TB, IN_F), tiled),
        pl.BlockSpec((IN_F, H1P), const),
        pl.BlockSpec((1, H1P), const),
        pl.BlockSpec((H1P, H2), const),
        pl.BlockSpec((1, H2), const),
        pl.BlockSpec((H2, NCP), const),
        pl.BlockSpec((1, NCP), const),
    ]
    out_specs = (
        pl.BlockSpec((TB, H1P), tiled),
        pl.BlockSpec((TB, H1P), tiled),
        pl.BlockSpec((TB, H2), tiled),
        pl.BlockSpec((TB, H2), tiled),
        pl.BlockSpec((TB, NCP), tiled),
        pl.BlockSpec((TB, NCP), tiled),
    )
    out_shape = (
        jax.ShapeDtypeStruct((B, H1P), jnp.float32),
        jax.ShapeDtypeStruct((B, H1P), jnp.float32),
        jax.ShapeDtypeStruct((B, H2), jnp.float32),
        jax.ShapeDtypeStruct((B, H2), jnp.float32),
        jax.ShapeDtypeStruct((B, NCP), jnp.float32),
        jax.ShapeDtypeStruct((B, NCP), jnp.float32),
    )

    t1p, t2p, t3p, t4p, t5p, t6p = pl.pallas_call(
        mlp_kernel,
        out_shape=out_shape,
        grid=grid,
        in_specs=in_specs,
        out_specs=out_specs,
        compiler_params=pltpu.CompilerParams(
            dimension_semantics=("parallel",),
            vmem_limit_bytes=32 * 1024 * 1024,
        ),
    )(x, w1t, b1p, w2t, b2p, w3t, b3p)

    # Slice lane-padded slabs back to the module's shapes (cheap fused XLA slices).
    return (t1p[:, :H1], t2p[:, :H1], t3p, t4p, t5p[:, :NC], t6p[:, :NC])


def init_params(key):
    """Deterministic parameter init matching nn.Linear shapes (out, in)."""
    ks = jax.random.split(key, 6)

    def linear(kw, kb, out_f, in_f):
        bound = 1.0 / jnp.sqrt(in_f)
        w = jax.random.uniform(kw, (out_f, in_f), jnp.float32, -bound, bound)
        b = jax.random.uniform(kb, (out_f,), jnp.float32, -bound, bound)
        return w, b

    w1, b1 = linear(ks[0], ks[1], H1, IN_F)
    w2, b2 = linear(ks[2], ks[3], H2, H1)
    w3, b3 = linear(ks[4], ks[5], NC, H2)
    return w1, b1, w2, b2, w3, b3


if __name__ == "__main__":
    key = jax.random.PRNGKey(0)
    kx, kp = jax.random.split(key)

    B = 8
    x = jax.random.normal(kx, (B, IN_F), jnp.float32)
    w1, b1, w2, b2, w3, b3 = init_params(kp)

    params = prepare_params(w1, b1, w2, b2, w3, b3)
    outs = mlp_sigmoid_parsing(x, params)
    outs = jax.block_until_ready(outs)

    # Reference in plain JAX, mirroring the kernel's bf16-matmul / f32-accumulate precision.
    xb = x.astype(jnp.bfloat16)
    r1 = jnp.dot(xb, w1.T.astype(jnp.bfloat16),
                 preferred_element_type=jnp.float32) + b1[None, :]
    r2 = _sigmoid(r1)
    r3 = jnp.dot(r2.astype(jnp.bfloat16), w2.T.astype(jnp.bfloat16),
                 preferred_element_type=jnp.float32) + b2[None, :]
    r4 = _sigmoid(r3)
    r5 = jnp.dot(r4.astype(jnp.bfloat16), w3.T.astype(jnp.bfloat16),
                 preferred_element_type=jnp.float32) + b3[None, :]
    r6 = jax.nn.softmax(r5, axis=-1)
    refs = (r1, r2, r3, r4, r5, r6)

    for name, o, r in zip(("t1", "t2", "t3", "t4", "t5", "t6"), outs, refs):
        assert o.shape == r.shape, (name, o.shape, r.shape)
        assert o.dtype == r.dtype, (name, o.dtype, r.dtype)
        err = float(jnp.max(jnp.abs(o - r)))
        assert err < 2e-2, (name, err)

    print("KERNEL_OK")
</pallas_src>

<mosaic_0001>
module attributes {stable_mosaic.version = 11 : i64} {
  func.func @mlp_kernel(%arg0: i32, %arg1: memref<8x784xf32, #tpu.memory_space<vmem>>, %arg2: memref<784x512xbf16, #tpu.memory_space<vmem>>, %arg3: memref<1x512xf32, #tpu.memory_space<vmem>>, %arg4: memref<512x256xbf16, #tpu.memory_space<vmem>>, %arg5: memref<1x256xf32, #tpu.memory_space<vmem>>, %arg6: memref<256x128xbf16, #tpu.memory_space<vmem>>, %arg7: memref<1x128xf32, #tpu.memory_space<vmem>>, %arg8: memref<8x512xf32, #tpu.memory_space<vmem>>, %arg9: memref<8x512xf32, #tpu.memory_space<vmem>>, %arg10: memref<8x256xf32, #tpu.memory_space<vmem>>, %arg11: memref<8x256xf32, #tpu.memory_space<vmem>>, %arg12: memref<8x128xf32, #tpu.memory_space<vmem>>, %arg13: memref<8x128xf32, #tpu.memory_space<vmem>>) attributes {dimension_semantics = [#tpu.dimension_semantics<parallel>], iteration_bounds = array<i64: 1>, scalar_prefetch = 0 : i64, scratch_operands = 0 : i64, tpu.core_type = #tpu.core_type<tc>, window_params = [{transform_indices = @transform_0, window_bounds = array<i64: 8, 784>}, {pipeline_mode = #tpu.pipeline_mode<synchronous>, transform_indices = @transform_1, window_bounds = array<i64: 784, 512>}, {pipeline_mode = #tpu.pipeline_mode<synchronous>, transform_indices = @transform_2, window_bounds = array<i64: 1, 512>}, {pipeline_mode = #tpu.pipeline_mode<synchronous>, transform_indices = @transform_3, window_bounds = array<i64: 512, 256>}, {pipeline_mode = #tpu.pipeline_mode<synchronous>, transform_indices = @transform_4, window_bounds = array<i64: 1, 256>}, {pipeline_mode = #tpu.pipeline_mode<synchronous>, transform_indices = @transform_5, window_bounds = array<i64: 256, 128>}, {pipeline_mode = #tpu.pipeline_mode<synchronous>, transform_indices = @transform_6, window_bounds = array<i64: 1, 128>}, {transform_indices = @transform_7, window_bounds = array<i64: 8, 512>}, {transform_indices = @transform_8, window_bounds = array<i64: 8, 512>}, {transform_indices = @transform_9, window_bounds = array<i64: 8, 256>}, {transform_indices = @transform_10, window_bounds = array<i64: 8, 256>}, {transform_indices = @transform_11, window_bounds = array<i64: 8, 128>}, {transform_indices = @transform_12, window_bounds = array<i64: 8, 128>}]} {
    %c0 = arith.constant 0 : index
    %c0_0 = arith.constant 0 : index
    %0 = vector.load %arg1[%c0, %c0_0] : memref<8x784xf32, #tpu.memory_space<vmem>>, vector<8x784xf32>
    %1 = arith.truncf %0 : vector<8x784xf32> to vector<8x784xbf16>
    %c0_1 = arith.constant 0 : index
    %c0_2 = arith.constant 0 : index
    %2 = vector.load %arg2[%c0_1, %c0_2] : memref<784x512xbf16, #tpu.memory_space<vmem>>, vector<784x512xbf16>
    %cst = arith.constant dense<0.000000e+00> : vector<8x512xf32>
    %3 = tpu.matmul %1, %2, %cst {dimension_numbers = #tpu.dot_dimension_numbers<[1], [0], [0], [1], [0, 0, 1, 1], [], []>} : vector<8x784xbf16>, vector<784x512xbf16>, vector<8x512xf32> -> vector<8x512xf32>
    %c0_3 = arith.constant 0 : index
    %c0_4 = arith.constant 0 : index
    %4 = vector.load %arg3[%c0_3, %c0_4] : memref<1x512xf32, #tpu.memory_space<vmem>>, vector<1x512xf32>
    %5 = vector.broadcast %4 : vector<1x512xf32> to vector<8x512xf32>
    %6 = arith.addf %3, %5 : vector<8x512xf32>
    %c0_5 = arith.constant 0 : index
    %c0_6 = arith.constant 0 : index
    %7 = vector.load %arg8[%c0_5, %c0_6] : memref<8x512xf32, #tpu.memory_space<vmem>>, vector<8x512xf32>
    tpu.vector_store %arg8[%c0_5, %c0_6], %6 {strides = array<i32>} : memref<8x512xf32, #tpu.memory_space<vmem>>, vector<8x512xf32>,
    %cst_7 = arith.constant 0.000000e+00 : f32
    %8 = vector.broadcast %cst_7 : f32 to vector<8x512xf32>
    %9 = arith.subf %8, %6 : vector<8x512xf32>
    %10 = math.exp %9 : vector<8x512xf32>
    %cst_8 = arith.constant 1.000000e+00 : f32
    %11 = vector.broadcast %cst_8 : f32 to vector<8x512xf32>
    %12 = arith.addf %11, %10 : vector<8x512xf32>
    %cst_9 = arith.constant 1.000000e+00 : f32
    %13 = vector.broadcast %cst_9 : f32 to vector<8x512xf32>
    %14 = arith.divf %13, %12 : vector<8x512xf32>
    %c0_10 = arith.constant 0 : index
    %c0_11 = arith.constant 0 : index
    %15 = vector.load %arg9[%c0_10, %c0_11] : memref<8x512xf32, #tpu.memory_space<vmem>>, vector<8x512xf32>
    tpu.vector_store %arg9[%c0_10, %c0_11], %14 {strides = array<i32>} : memref<8x512xf32, #tpu.memory_space<vmem>>, vector<8x512xf32>,
    %16 = arith.truncf %14 : vector<8x512xf32> to vector<8x512xbf16>
    %c0_12 = arith.constant 0 : index
    %c0_13 = arith.constant 0 : index
    %17 = vector.load %arg4[%c0_12, %c0_13] : memref<512x256xbf16, #tpu.memory_space<vmem>>, vector<512x256xbf16>
    %cst_14 = arith.constant dense<0.000000e+00> : vector<8x256xf32>
    %18 = tpu.matmul %16, %17, %cst_14 {dimension_numbers = #tpu.dot_dimension_numbers<[1], [0], [0], [1], [0, 0, 1, 1], [], []>} : vector<8x512xbf16>, vector<512x256xbf16>, vector<8x256xf32> -> vector<8x256xf32>
    %c0_15 = arith.constant 0 : index
    %c0_16 = arith.constant 0 : index
    %19 = vector.load %arg5[%c0_15, %c0_16] : memref<1x256xf32, #tpu.memory_space<vmem>>, vector<1x256xf32>
    %20 = vector.broadcast %19 : vector<1x256xf32> to vector<8x256xf32>
    %21 = arith.addf %18, %20 : vector<8x256xf32>
    %c0_17 = arith.constant 0 : index
    %c0_18 = arith.constant 0 : index
    %22 = vector.load %arg10[%c0_17, %c0_18] : memref<8x256xf32, #tpu.memory_space<vmem>>, vector<8x256xf32>
    tpu.vector_store %arg10[%c0_17, %c0_18], %21 {strides = array<i32>} : memref<8x256xf32, #tpu.memory_space<vmem>>, vector<8x256xf32>,
    %cst_19 = arith.constant 0.000000e+00 : f32
    %23 = vector.broadcast %cst_19 : f32 to vector<8x256xf32>
    %24 = arith.subf %23, %21 : vector<8x256xf32>
    %25 = math.exp %24 : vector<8x256xf32>
    %cst_20 = arith.constant 1.000000e+00 : f32
    %26 = vector.broadcast %cst_20 : f32 to vector<8x256xf32>
    %27 = arith.addf %26, %25 : vector<8x256xf32>
    %cst_21 = arith.constant 1.000000e+00 : f32
    %28 = vector.broadcast %cst_21 : f32 to vector<8x256xf32>
    %29 = arith.divf %28, %27 : vector<8x256xf32>
    %c0_22 = arith.constant 0 : index
    %c0_23 = arith.constant 0 : index
    %30 = vector.load %arg11[%c0_22, %c0_23] : memref<8x256xf32, #tpu.memory_space<vmem>>, vector<8x256xf32>
    tpu.vector_store %arg11[%c0_22, %c0_23], %29 {strides = array<i32>} : memref<8x256xf32, #tpu.memory_space<vmem>>, vector<8x256xf32>,
    %31 = arith.truncf %29 : vector<8x256xf32> to vector<8x256xbf16>
    %c0_24 = arith.constant 0 : index
    %c0_25 = arith.constant 0 : index
    %32 = vector.load %arg6[%c0_24, %c0_25] : memref<256x128xbf16, #tpu.memory_space<vmem>>, vector<256x128xbf16>
    %cst_26 = arith.constant dense<0.000000e+00> : vector<8x128xf32>
    %33 = tpu.matmul %31, %32, %cst_26 {dimension_numbers = #tpu.dot_dimension_numbers<[1], [0], [0], [1], [0, 0, 1, 1], [], []>} : vector<8x256xbf16>, vector<256x128xbf16>, vector<8x128xf32> -> vector<8x128xf32>
    %c0_27 = arith.constant 0 : index
    %c0_28 = arith.constant 0 : index
    %34 = vector.load %arg7[%c0_27, %c0_28] : memref<1x128xf32, #tpu.memory_space<vmem>>, vector<1x128xf32>
    %35 = vector.broadcast %34 : vector<1x128xf32> to vector<8x128xf32>
    %36 = arith.addf %33, %35 : vector<8x128xf32>
    %c0_29 = arith.constant 0 : index
    %c0_30 = arith.constant 0 : index
    %37 = vector.load %arg12[%c0_29, %c0_30] : memref<8x128xf32, #tpu.memory_space<vmem>>, vector<8x128xf32>
    tpu.vector_store %arg12[%c0_29, %c0_30], %36 {strides = array<i32>} : memref<8x128xf32, #tpu.memory_space<vmem>>, vector<8x128xf32>,
    %38 = tpu.iota {dimensions = array<i32: 1>} : vector<8x128xi32>
    %c10_i32 = arith.constant 10 : i32
    %39 = vector.broadcast %c10_i32 : i32 to vector<8x128xi32>
    %40 = arith.cmpi slt, %38, %39 : vector<8x128xi32>
    %cst_31 = arith.constant -1.000000e+30 : f32
    %41 = vector.broadcast %cst_31 : f32 to vector<8x128xf32>
    %42 = arith.select %40, %36, %41 : vector<8x128xi1>, vector<8x128xf32>
    %cst_32 = arith.constant dense<0xFF800000> : vector<8xf32>
    %43 = vector.multi_reduction <maximumf>, %42, %cst_32 [1] : vector<8x128xf32> to vector<8xf32>
    %44 = vector.shape_cast %43 : vector<8xf32> to vector<8x1xf32>
    %45 = vector.broadcast %44 : vector<8x1xf32> to vector<8x128xf32>
    %46 = arith.subf %42, %45 : vector<8x128xf32>
    %47 = math.exp %46 : vector<8x128xf32>
    %cst_33 = arith.constant dense<0.000000e+00> : vector<8xf32>
    %48 = vector.multi_reduction <add>, %47, %cst_33 [1] : vector<8x128xf32> to vector<8xf32>
    %49 = vector.shape_cast %48 : vector<8xf32> to vector<8x1xf32>
    %50 = tpu.reciprocal %49 {approx = true} : vector<8x1xf32> -> vector<8x1xf32>
    %51 = vector.broadcast %50 : vector<8x1xf32> to vector<8x128xf32>
    %52 = arith.mulf %47, %51 : vector<8x128xf32>
    %c0_34 = arith.constant 0 : index
    %c0_35 = arith.constant 0 : index
    %53 = vector.load %arg13[%c0_34, %c0_35] : memref<8x128xf32, #tpu.memory_space<vmem>>, vector<8x128xf32>
    tpu.vector_store %arg13[%c0_34, %c0_35], %52 {strides = array<i32>} : memref<8x128xf32, #tpu.memory_space<vmem>>, vector<8x128xf32>,
    return
  }
  func.func @transform_0(%arg0: i32) -> (i32, i32) {
    %c0_i32 = arith.constant 0 : i32
    %c0_i32_0 = arith.constant 0 : i32
    return %arg0, %c0_i32 : i32, i32
  }
  func.func @transform_1(%arg0: i32) -> (i32, i32) {
    %c0_i32 = arith.constant 0 : i32
    %c0_i32_0 = arith.constant 0 : i32
    %c0_i32_1 = arith.constant 0 : i32
    return %c0_i32, %c0_i32_0 : i32, i32
  }
  func.func @transform_2(%arg0: i32) -> (i32, i32) {
    %c0_i32 = arith.constant 0 : i32
    %c0_i32_0 = arith.constant 0 : i32
    %c0_i32_1 = arith.constant 0 : i32
    return %c0_i32, %c0_i32_0 : i32, i32
  }
  func.func @transform_3(%arg0: i32) -> (i32, i32) {
    %c0_i32 = arith.constant 0 : i32
    %c0_i32_0 = arith.constant 0 : i32
    %c0_i32_1 = arith.constant 0 : i32
    return %c0_i32, %c0_i32_0 : i32, i32
  }
  func.func @transform_4(%arg0: i32) -> (i32, i32) {
    %c0_i32 = arith.constant 0 : i32
    %c0_i32_0 = arith.constant 0 : i32
    %c0_i32_1 = arith.constant 0 : i32
    return %c0_i32, %c0_i32_0 : i32, i32
  }
  func.func @transform_5(%arg0: i32) -> (i32, i32) {
    %c0_i32 = arith.constant 0 : i32
    %c0_i32_0 = arith.constant 0 : i32
    %c0_i32_1 = arith.constant 0 : i32
    return %c0_i32, %c0_i32_0 : i32, i32
  }
  func.func @transform_6(%arg0: i32) -> (i32, i32) {
    %c0_i32 = arith.constant 0 : i32
    %c0_i32_0 = arith.constant 0 : i32
    %c0_i32_1 = arith.constant 0 : i32
    return %c0_i32, %c0_i32_0 : i32, i32
  }
  func.func @transform_7(%arg0: i32) -> (i32, i32) {
    %c0_i32 = arith.constant 0 : i32
    %c0_i32_0 = arith.constant 0 : i32
    return %arg0, %c0_i32 : i32, i32
  }
  func.func @transform_8(%arg0: i32) -> (i32, i32) {
    %c0_i32 = arith.constant 0 : i32
    %c0_i32_0 = arith.constant 0 : i32
    return %arg0, %c0_i32 : i32, i32
  }
  func.func @transform_9(%arg0: i32) -> (i32, i32) {
    %c0_i32 = arith.constant 0 : i32
    %c0_i32_0 = arith.constant 0 : i32
    return %arg0, %c0_i32 : i32, i32
  }
  func.func @transform_10(%arg0: i32) -> (i32, i32) {
    %c0_i32 = arith.constant 0 : i32
    %c0_i32_0 = arith.constant 0 : i32
    return %arg0, %c0_i32 : i32, i32
  }
  func.func @transform_11(%arg0: i32) -> (i32, i32) {
    %c0_i32 = arith.constant 0 : i32
    %c0_i32_0 = arith.constant 0 : i32
    return %arg0, %c0_i32 : i32, i32
  }
  func.func @transform_12(%arg0: i32) -> (i32, i32) {
    %c0_i32 = arith.constant 0 : i32
    %c0_i32_0 = arith.constant 0 : i32
    return %arg0, %c0_i32 : i32, i32
  }
}

</mosaic_0001>

<bundles_post_ra>
// kernel: mlp_sigmoid_parsing.1
= control target key start
LH: loop header
LB: loop body
LE: loop exit
PB: predicated region body
PF: predicated region fallthrough
CT: control target
= control target key end

     0   :  { %18 = vsyncpa [#allocation3], 0  ;;  %s4475_s0 = inlined_call_operand.hbm [shape: f32[8,784], index: 0, kind: input, shape index: {}]   ;;  %s4476_s1 = inlined_call_operand.hbm [shape: bf16[784,512], index: 1, kind: input, shape index: {}]   ;;  %s4477_s2 = inlined_call_operand.hbm [shape: f32[1,512], index: 2, kind: input, shape index: {}]   ;;  %s4478_s3 = inlined_call_operand.hbm [shape: bf16[512,256], index: 3, kind: input, shape index: {}]   ;;  %s4479_s4 = inlined_call_operand.vmem [shape: f32[1,256], index: 4, kind: input, shape index: {}]   ;;  %s4480_s5 = inlined_call_operand.hbm [shape: bf16[256,128], index: 5, kind: input, shape index: {}]   ;;  %s4481_s6 = inlined_call_operand.vmem [shape: f32[1,128], index: 6, kind: input, shape index: {}]   ;;  %s4482_s7 = inlined_call_operand.hbm [shape: f32[8,512], index: 7, kind: output, shape index: {0}]   ;;  %s4483_s8 = inlined_call_operand.hbm [shape: f32[8,512], index: 8, kind: output, shape index: {1}]   ;;  %s4484_s9 = inlined_call_operand.hbm [shape: f32[8,256], index: 9, kind: output, shape index: {2}]   ;;  %s4485_s10 = inlined_call_operand.hbm [shape: f32[8,256], index: 10, kind: output, shape index: {3}]   ;;  %s4486_s11 = inlined_call_operand.hbm [shape: f32[8,128], index: 11, kind: output, shape index: {4}]   ;;  %s4487_s12 = inlined_call_operand.hbm [shape: f32[8,128], index: 12, kind: output, shape index: {5}]  }
   0x1   :  { %19 = vsyncpa [#allocation6], 0 }
   0x2   :  { %20 = vsyncpa [#allocation9], 0 }
   0x3   :  { %21 = vsyncpa [#allocation4], 0 }
   0x4   :  { %22 = vsyncpa [#allocation13], 0 }
   0x5   :  { %23 = vsyncpa [#allocation16], 0  ;;  %s40_s23 = sshll.u32 %s4476_s1, 4  ;;  %s41_s23 = int_to_ptr.hbm [resolvable:$true] %s40_s23 }
   0x6   :  { %24 = vsyncpa [#allocation19], 0  ;;  %s4283_s24 = smov [#allocation5]   ;;  %s64_s28 = sshll.u32 %s4478_s3, 4  ;;  %s65_s28 = int_to_ptr.hbm [resolvable:$true] %s64_s28 }
   0x7   :  { %s42_s25 = sshll.u32 %s4283_s24, 4  ;;  %s4284_s29 = smov 256   ;;  %s43_s25 = int_to_ptr.vmem [resolvable:$true] %s42_s25 }
   0x8   :  { %s4285_s30 = smov 16   ;;  %s4286_s13 = smov [#allocation8]  }
   0x9   :  { %48 = dma.hbm_to_vmem [thread:$0]  %s41_s23, 25088, %s43_s25, [#allocation6], %s4284_s29, %s4284_s29, %s4285_s30  }
   0xa   :  { %s66_s14 = sshll.u32 %s4286_s13, 4  ;;  %s4287_s15 = smov 128   ;;  %s67_s14 = int_to_ptr.vmem [resolvable:$true] %s66_s14 }
   0xb   :  { %s4288_s16 = smov 8   ;;  %s30_s18 = sshll.u32 %s4475_s0, 4  ;;  %s31_s18 = int_to_ptr.hbm [resolvable:$true] %s30_s18 }
   0xc   :  { %72 = dma.hbm_to_vmem [thread:$0]  %s65_s28, 8192, %s67_s14, [#allocation9], %s4287_s15, %s4287_s15, %s4288_s16  }
   0xd   :  { %s4289_s19 = smov [#allocation2]   ;;  %s54_s22 = sshll.u32 %s4477_s2, 4  ;;  %s55_s22 = int_to_ptr.hbm [resolvable:$true] %s54_s22 }
   0xe   :  { %s32_s20 = sshll.u32 %s4289_s19, 4  ;;  %s4290_s23 = smov [#allocation7]   ;;  %s33_s20 = int_to_ptr.vmem [resolvable:$true] %s32_s20 }
   0xf   :  { %35 = dma.hbm_to_vmem [thread:$0]  %s31_s18, 896, %s33_s20, [#allocation3]  }
  0x10   :  { %s56_s24 = sshll.u32 %s4290_s23, 4  ;;  %s79_s27 = sshll.u32 %s4480_s5, 4  ;;  %s57_s24 = int_to_ptr.vmem [resolvable:$true] %s56_s24  ;;  %s80_s27 = int_to_ptr.hbm [resolvable:$true] %s79_s27 }
  0x11   :  { %59 = dma.hbm_to_vmem [thread:$0]  %s55_s22, 64, %s57_s24, [#allocation6]  }
  0x12   :  { %s4291_s0 = smov [#allocation10]   ;;  %s4292_s29 = smov 64  }
  0x13   :  { %s81_s28 = sshll.u32 %s4291_s0, 4  ;;  %s4293_s30 = smov 4   ;;  %s82_s28 = int_to_ptr.vmem [resolvable:$true] %s81_s28 }
  0x14   :  { %87 = dma.hbm_to_vmem [thread:$0]  %s80_s27, 2048, %s82_s28, [#allocation9], %s4292_s29, %s4292_s29, %s4293_s30  }
  0x15   :  { %4269 = dma.done.wait [#allocation3], 896  }
  0x16   :  { %4270 = vsyncadd [#allocation3], 4294966400 }
  0x17   :  { %4271 = dma.done.wait [#allocation6], 25152  }
  0x18   :  { %4272 = vsyncadd [#allocation6], 4294942144 }
  0x19   :  { %4273 = dma.done.wait [#allocation9], 10240  }
  0x1a   :  { %4274 = vsyncadd [#allocation9], 4294957056  ;;  %v2689_v0 = vld [vmem:[#allocation5 + $0xe0] sm:$0xf]  ;;  %v3713_v1 = vld [vmem:[#allocation5 + $0xec] sm:$0xf0] }
  0x1b   :  { %v2817_v2 = vld [vmem:[#allocation5 + $0x1e0] sm:$0xf]  ;;  %v2690_v3 = vor.u32 %v3713_v1, %v2689_v0  ;;  %v3745_v4 = vld [vmem:[#allocation5 + $0x1ec] sm:$0xf0]  ;;  %vm1311_vm0 = vcmask 130048   ;;  %s2496_s16 = sshll.u32 %s4483_s8, 4  ;;  %s2497_s16 = int_to_ptr.hbm [resolvable:$true] %s2496_s16 }
  0x1c   :  { %v2945_v5 = vld [vmem:[#allocation5 + $0x2e0] sm:$0xf]  ;;  %v3777_v6 = vld [vmem:[#allocation5 + $0x2ec] sm:$0xf0]  ;;  %v2818_v7 = vor.u32 %v3745_v4, %v2817_v2  ;;  %s4294_s1 = smov [#allocation12]   ;;  %s2518_s21 = sshll.u32 %s4485_s10, 4  ;;  %s2519_s21 = int_to_ptr.hbm [resolvable:$true] %s2518_s21 }
  0x1d   :  { %v2946_v8 = vor.u32 %v3777_v6, %v2945_v5  ;;  %v3073_v9 = vld [vmem:[#allocation5 + $0x3e0] sm:$0xf]  ;;  %v3809_v10 = vld [vmem:[#allocation5 + $0x3ec] sm:$0xf0]  ;;  %1315 = vmatpush.bf16.msra.mxu0 %v2690_v3  ;;  %s2494_s17 = sshll.u32 %s4294_s1, 4  ;;  %s2485_s8 = sshll.u32 %s4482_s7, 4  ;;  %s2495_s17 = int_to_ptr.vmem [resolvable:$true] %s2494_s17  ;;  %s2486_s8 = int_to_ptr.hbm [resolvable:$true] %s2485_s8 }
  0x1e   :  { %v2673_v11 = vld [vmem:[#allocation5 + $0xc0] sm:$0xf]  ;;  %v3074_v12 = vor.u32 %v3809_v10, %v3073_v9  ;;  %v3709_v13 = vld [vmem:[#allocation5 + $0xcc] sm:$0xf0]  ;;  %1328 = vmatpush.bf16.msra.mxu1 %v2818_v7  ;;  %s4296_s23 = smov [#allocation11]   ;;  %s4297_s25 = smov [#allocation14]  }
  0x1f   :  { %v2801_v14 = vld [vmem:[#allocation5 + $0x1c0] sm:$0xf]  ;;  %v3741_v15 = vld [vmem:[#allocation5 + $0x1cc] sm:$0xf0]  ;;  %1341 = vmatpush.bf16.msra.mxu2 %v2946_v8  ;;  %v2674_v16 = vor.u32 %v3709_v13, %v2673_v11  ;;  %s2483_s24 = sshll.u32 %s4296_s23, 4  ;;  %s2505_s26 = sshll.u32 %s4297_s25, 4  ;;  %s2484_s24 = int_to_ptr.vmem [resolvable:$true] %s2483_s24  ;;  %s2506_s26 = int_to_ptr.vmem [resolvable:$true] %s2505_s26 }
  0x20   :  { %v2802_v17 = vor.u32 %v3741_v15, %v2801_v14  ;;  %v2929_v18 = vld [vmem:[#allocation5 + $0x2c0] sm:$0xf]  ;;  %v3773_v19 = vld [vmem:[#allocation5 + $0x2cc] sm:$0xf0]  ;;  %1354 = vmatpush.bf16.msra.mxu3 %v3074_v12  ;;  %s2507_s10 = sshll.u32 %s4484_s9, 4  ;;  %s2529_s7 = sshll.u32 %s4486_s11, 4  ;;  %s2508_s10 = int_to_ptr.hbm [resolvable:$true] %s2507_s10  ;;  %s2530_s7 = int_to_ptr.hbm [resolvable:$true] %s2529_s7 }
  0x21   :  { %v3057_v20 = vld [vmem:[#allocation5 + $0x3c0] sm:$0xf]  ;;  %v2930_v21 = vor.u32 %v3773_v19, %v2929_v18  ;;  %v3805_v22 = vld [vmem:[#allocation5 + $0x3cc] sm:$0xf0]  ;;  %1316 = vmatpush.bf16.msra.mxu0 %v2674_v16  ;;  %s4298_s30 = smov [#allocation17]   ;;  %s4299_s5 = smov [#allocation18]  }
  0x22   :  { %v2657_v23 = vld [vmem:[#allocation5 + $0xa0] sm:$0xf]  ;;  %v3705_v24 = vld [vmem:[#allocation5 + $0xac] sm:$0xf0]  ;;  %v3058_v25 = vor.u32 %v3805_v22, %v3057_v20  ;;  %1329 = vmatpush.bf16.msra.mxu1 %v2802_v17  ;;  %s2527_s2 = sshll.u32 %s4298_s30, 4  ;;  %s2540_s9 = sshll.u32 %s4487_s12, 4  ;;  %s2528_s2 = int_to_ptr.vmem [resolvable:$true] %s2527_s2  ;;  %s2541_s9 = int_to_ptr.hbm [resolvable:$true] %s2540_s9 }
  0x23   :  { %v2785_v26 = vld [vmem:[#allocation5 + $0x1a0] sm:$0xf]  ;;  %v3737_v27 = vld [vmem:[#allocation5 + $0x1ac] sm:$0xf0]  ;;  %v2658_v29 = vor.u32 %v3705_v24, %v2657_v23  ;;  %1342 = vmatpush.bf16.msra.mxu2 %v2930_v21 }
  0x24   :  { %v2913_v28 = vld [vmem:[#allocation5 + $0x2a0] sm:$0xf]  ;;  %v3769_v30 = vld [vmem:[#allocation5 + $0x2ac] sm:$0xf0]  ;;  %v2786_v33 = vor.u32 %v3737_v27, %v2785_v26  ;;  %1355 = vmatpush.bf16.msra.mxu3 %v3058_v25 }
  0x25   :  { %v3041_v31 = vld [vmem:[#allocation5 + $0x3a0] sm:$0xf]  ;;  %v3801_v32 = vld [vmem:[#allocation5 + $0x3ac] sm:$0xf0]  ;;  %v2914_v34 = vor.u32 %v3769_v30, %v2913_v28  ;;  %1317 = vmatpush.bf16.msra.mxu0 %v2658_v29 }
  0x26   :  { %v2641_v35 = vld [vmem:[#allocation5 + $0x80] sm:$0xf]  ;;  %v3701_v36 = vld [vmem:[#allocation5 + $0x8c] sm:$0xf0]  ;;  %v3042_v38 = vor.u32 %v3801_v32, %v3041_v31  ;;  %1330 = vmatpush.bf16.msra.mxu1 %v2786_v33  ;;  %v3711_v33 = vld [vmem:[#allocation5 + $0xe4] sm:$0xf] }
  0x27   :  { %v2769_v37 = vld [vmem:[#allocation5 + $0x180] sm:$0xf]  ;;  %v3733_v39 = vld [vmem:[#allocation5 + $0x18c] sm:$0xf0]  ;;  %v2642_v44 = vor.u32 %v3701_v36, %v2641_v35  ;;  %1343 = vmatpush.bf16.msra.mxu2 %v2914_v34  ;;  %v2691_v34 = vld [vmem:[#allocation5 + $0xf0] sm:$0xf0] }
  0x28   :  { %v2897_v40 = vld [vmem:[#allocation5 + $0x280] sm:$0xf]  ;;  %v3765_v41 = vld [vmem:[#allocation5 + $0x28c] sm:$0xf0]  ;;  %v2770_v45 = vor.u32 %v3733_v39, %v2769_v37  ;;  %1356 = vmatpush.bf16.msra.mxu3 %v3042_v38  ;;  %v113_v35 = vld [vmem:[#allocation2 + $0x10] sm:$0xff] }
  0x29   :  { %v3025_v42 = vld [vmem:[#allocation5 + $0x380] sm:$0xf]  ;;  %v3797_v43 = vld [vmem:[#allocation5 + $0x38c] sm:$0xf0]  ;;  %v2898_v46 = vor.u32 %v3765_v41, %v2897_v40  ;;  %1318 = vmatpush.bf16.msra.mxu0 %v2642_v44  ;;  %v111_v40 = vld [vmem:[#allocation2] sm:$0xff] }
  0x2a   :  { %v2625_v47 = vld [vmem:[#allocation5 + $0x60] sm:$0xf]  ;;  %v3697_v48 = vld [vmem:[#allocation5 + $0x6c] sm:$0xf0]  ;;  %v3026_v50 = vor.u32 %v3797_v43, %v3025_v42  ;;  %1331 = vmatpush.bf16.msra.mxu1 %v2770_v45  ;;  %v3743_v43 = vld [vmem:[#allocation5 + $0x1e4] sm:$0xf] }
  0x2b   :  { %v2753_v49 = vld [vmem:[#allocation5 + $0x160] sm:$0xf]  ;;  %v3729_v51 = vld [vmem:[#allocation5 + $0x16c] sm:$0xf0]  ;;  %v2626_v56 = vor.u32 %v3697_v48, %v2625_v47  ;;  %1344 = vmatpush.bf16.msra.mxu2 %v2898_v46  ;;  %v2819_v44 = vld [vmem:[#allocation5 + $0x1f0] sm:$0xf0]  ;;  %v2694_v47 = vor.u32 %v3711_v33, %v2691_v34 }
  0x2c   :  { %v2881_v52 = vld [vmem:[#allocation5 + $0x260] sm:$0xf]  ;;  %v3761_v53 = vld [vmem:[#allocation5 + $0x26c] sm:$0xf0]  ;;  %v2754_v57 = vor.u32 %v3729_v51, %v2753_v49  ;;  %1357 = vmatpush.bf16.msra.mxu3 %v3026_v50  ;;  %v4380_v51 = vpack.c.bf16 %v113_v35, %v113_v35  ;;  %v3727_v35 = vld [vmem:[#allocation5 + $0x164] sm:$0xf] }
  0x2d   :  { %v3009_v54 = vld [vmem:[#allocation5 + $0x360] sm:$0xf]  ;;  %v3793_v55 = vld [vmem:[#allocation5 + $0x36c] sm:$0xf0]  ;;  %v2882_v58 = vor.u32 %v3761_v53, %v2881_v52  ;;  %1319 = vmatpush.bf16.msra.mxu0 %v2626_v56  ;;  %v3707_v53 = vld [vmem:[#allocation5 + $0xc4] sm:$0xf] }
  0x2e   :  { %v2609_v59 = vld [vmem:[#allocation5 + $0x40] sm:$0xf]  ;;  %v3693_v60 = vld [vmem:[#allocation5 + $0x4c] sm:$0xf0]  ;;  %v3010_v62 = vor.u32 %v3793_v55, %v3009_v54  ;;  %1332 = vmatpush.bf16.msra.mxu1 %v2754_v57  ;;  %v2675_v54 = vld [vmem:[#allocation5 + $0xd0] sm:$0xf0]  ;;  %v4382_v55 = vpack.c.bf16 %v111_v40, %v111_v40 }
  0x2f   :  { %v2737_v61 = vld [vmem:[#allocation5 + $0x140] sm:$0xf]  ;;  %v3725_v63 = vld [vmem:[#allocation5 + $0x14c] sm:$0xf0]  ;;  %v2610_v4 = vor.u32 %v3693_v60, %v2609_v59  ;;  %1345 = vmatpush.bf16.msra.mxu2 %v2882_v58  ;;  %v2822_v59 = vor.u32 %v3743_v43, %v2819_v44  ;;  %v3691_v43 = vld [vmem:[#allocation5 + $0x44] sm:$0xf] }
  0x30   :  { %v2865_v0 = vld [vmem:[#allocation5 + $0x240] sm:$0xf]  ;;  %v3757_v1 = vld [vmem:[#allocation5 + $0x24c] sm:$0xf0]  ;;  %v2738_v5 = vor.u32 %v3725_v63, %v2737_v61  ;;  %1358 = vmatpush.bf16.msra.mxu3 %v3010_v62  ;;  %v3739_v61 = vld [vmem:[#allocation5 + $0x1c4] sm:$0xf] }
  0x31   :  { %v2993_v2 = vld [vmem:[#allocation5 + $0x340] sm:$0xf]  ;;  %v3789_v3 = vld [vmem:[#allocation5 + $0x34c] sm:$0xf0]  ;;  %v2866_v6 = vor.u32 %v3757_v1, %v2865_v0  ;;  %1320 = vmatpush.bf16.msra.mxu0 %v2610_v4  ;;  %v2803_v62 = vld [vmem:[#allocation5 + $0x1d0] sm:$0xf0]  ;;  %v2678_v0 = vor.u32 %v3707_v53, %v2675_v54 }
  0x32   :  { %v2593_v7 = vld [vmem:[#allocation5 + $0x20] sm:$0xf]  ;;  %v3689_v8 = vld [vmem:[#allocation5 + $0x2c] sm:$0xf0]  ;;  %v2994_v10 = vor.u32 %v3789_v3, %v2993_v2  ;;  %1333 = vmatpush.bf16.msra.mxu1 %v2738_v5  ;;  %v2611_v44 = vld [vmem:[#allocation5 + $0x50] sm:$0xf0] }
  0x33   :  { %v2721_v9 = vld [vmem:[#allocation5 + $0x120] sm:$0xf]  ;;  %v3721_v11 = vld [vmem:[#allocation5 + $0x12c] sm:$0xf0]  ;;  %v2594_v16 = vor.u32 %v3689_v8, %v2593_v7  ;;  %1346 = vmatpush.bf16.msra.mxu2 %v2866_v6  ;;  %v3703_v6 = vld [vmem:[#allocation5 + $0xa4] sm:$0xf]  ;;  %v2806_v8 = vor.u32 %v3739_v61, %v2803_v62 }
  0x34   :  { %v2849_v12 = vld [vmem:[#allocation5 + $0x220] sm:$0xf]  ;;  %v3753_v13 = vld [vmem:[#allocation5 + $0x22c] sm:$0xf0]  ;;  %v2722_v20 = vor.u32 %v3721_v11, %v2721_v9  ;;  %1359 = vmatpush.bf16.msra.mxu3 %v2994_v10  ;;  %v2659_v7 = vld [vmem:[#allocation5 + $0xb0] sm:$0xf0] }
  0x35   :  { %v2977_v14 = vld [vmem:[#allocation5 + $0x320] sm:$0xf]  ;;  %v3785_v15 = vld [vmem:[#allocation5 + $0x32c] sm:$0xf0]  ;;  %v2850_v21 = vor.u32 %v3753_v13, %v2849_v12  ;;  %1321 = vmatpush.bf16.msra.mxu0 %v2594_v16  ;;  %v3735_v10 = vld [vmem:[#allocation5 + $0x1a4] sm:$0xf]  ;;  %v2662_v13 = vor.u32 %v3703_v6, %v2659_v7 }
  0x36   :  { %v2577_v17 = vld [vmem:[#allocation5] sm:$0xf]  ;;  %v3685_v18 = vld [vmem:[#allocation5 + $0xc] sm:$0xf0]  ;;  %v2978_v25 = vor.u32 %v3785_v15, %v2977_v14  ;;  %1334 = vmatpush.bf16.msra.mxu1 %v2722_v20  ;;  %v2787_v11 = vld [vmem:[#allocation5 + $0x1b0] sm:$0xf0] }
  0x37   :  { %v2705_v19 = vld [vmem:[#allocation5 + $0x100] sm:$0xf]  ;;  %v3717_v22 = vld [vmem:[#allocation5 + $0x10c] sm:$0xf0]  ;;  %v2578_v32 = vor.u32 %v3685_v18, %v2577_v17  ;;  %1347 = vmatpush.bf16.msra.mxu2 %v2850_v21  ;;  %v3699_v18 = vld [vmem:[#allocation5 + $0x84] sm:$0xf]  ;;  %v2790_v20 = vor.u32 %v3735_v10, %v2787_v11 }
  0x38   :  { %v2833_v23 = vld [vmem:[#allocation5 + $0x200] sm:$0xf]  ;;  %v3749_v24 = vld [vmem:[#allocation5 + $0x20c] sm:$0xf0]  ;;  %v2706_v36 = vor.u32 %v3717_v22, %v2705_v19  ;;  %1360 = vmatpush.bf16.msra.mxu3 %v2978_v25  ;;  %v2643_v19 = vld [vmem:[#allocation5 + $0x90] sm:$0xf0] }
  0x39   :  { %v2961_v26 = vld [vmem:[#allocation5 + $0x300] sm:$0xf]  ;;  %v3781_v27 = vld [vmem:[#allocation5 + $0x30c] sm:$0xf0]  ;;  %v2834_v37 = vor.u32 %v3749_v24, %v2833_v23  ;;  %1322 = vmatpush.bf16.msra.mxu0 %v2578_v32  ;;  %v3731_v22 = vld [vmem:[#allocation5 + $0x184] sm:$0xf]  ;;  %v2646_v25 = vor.u32 %v3699_v18, %v2643_v19 }
  0x3a   :  { %v3201_v28 = vld [vmem:[#allocation5 + $0x4e0] sm:$0xf]  ;;  %v3841_v29 = vld [vmem:[#allocation5 + $0x4ec] sm:$0xf0]  ;;  %v2962_v41 = vor.u32 %v3781_v27, %v2961_v26  ;;  %1335 = vmatpush.bf16.msra.mxu1 %v2706_v36  ;;  %v2771_v23 = vld [vmem:[#allocation5 + $0x190] sm:$0xf0] }
  0x3b   :  { %v3329_v30 = vld [vmem:[#allocation5 + $0x5e0] sm:$0xf]  ;;  %v3873_v31 = vld [vmem:[#allocation5 + $0x5ec] sm:$0xf0]  ;;  %v3202_v42 = vor.u32 %v3841_v29, %v3201_v28  ;;  %1348 = vmatpush.bf16.msra.mxu2 %v2834_v37  ;;  %v117_v32 = vld [vmem:[#allocation2 + $0x30] sm:$0xff]  ;;  %v2774_v33 = vor.u32 %v3731_v22, %v2771_v23 }
  0x3c   :  { %v3345_v38 = vld [vmem:[#allocation5 + $0x600] sm:$0xf]  ;;  %v3877_v39 = vld [vmem:[#allocation5 + $0x60c] sm:$0xf0]  ;;  %v3330_v46 = vor.u32 %v3873_v31, %v3329_v30  ;;  %1361 = vmatpush.bf16.msra.mxu3 %v2962_v41  ;;  %1323 = vmatmul.bf16.vlgmr.msra.gmra.mxu0 %v4382_v55  ;;  %v3695_v30 = vld [vmem:[#allocation5 + $0x64] sm:$0xf] }
  0x3d   :  { %v114_v45 = vld [vmem:[#allocation2 + $0x18] sm:$0xff]  ;;  %v3837_v49 = vld [vmem:[#allocation5 + $0x4cc] sm:$0xf0]  ;;  %v3346_v56 = vor.u32 %v3877_v39, %v3345_v38  ;;  %1367 = vmatpush.bf16.msrb.mxu0 %v3202_v42  ;;  %v2627_v31 = vld [vmem:[#allocation5 + $0x70] sm:$0xf0] }
  0x3e   :  { %v3185_v48 = vld [vmem:[#allocation5 + $0x4c0] sm:$0xf]  ;;  %v3869_v52 = vld [vmem:[#allocation5 + $0x5cc] sm:$0xf0]  ;;  %v4384_v57 = vpack.c.bf16 %v114_v45, %v114_v45  ;;  %1380 = vmatpush.bf16.msrb.mxu1 %v3330_v46  ;;  %1349 = vmatmul.bf16.vlgmr.msra.gmra.mxu2 %v4380_v51  ;;  %v2755_v36 = vld [vmem:[#allocation5 + $0x170] sm:$0xf0]  ;;  %v2630_v38 = vor.u32 %v3695_v30, %v2627_v31  ;;  %v4392_v45 = vpack.c.bf16 %v117_v32, %v117_v32 }
  0x3f   :  { %v3313_v50 = vld [vmem:[#allocation5 + $0x5c0] sm:$0xf]  ;;  %v112_v58 = vld [vmem:[#allocation2 + $0x8] sm:$0xff]  ;;  %v3186_v60 = vor.u32 %v3837_v49, %v3185_v48  ;;  %1400 = vmatpush.bf16.msrb.mxu2 %v3346_v56  ;;  %v2758_v46 = vor.u32 %v3727_v35, %v2755_v36  ;;  %v3723_v48 = vld [vmem:[#allocation5 + $0x144] sm:$0xf] }
  0x40   :  { %1406 = vmatpush.bf16.msrb.mxu3 %v2694_v47  ;;  %v3314_v63 = vor.u32 %v3869_v52, %v3313_v50  ;;  %v3169_v1 = vld [vmem:[#allocation5 + $0x4a0] sm:$0xf]  ;;  %v3833_v2 = vld [vmem:[#allocation5 + $0x4ac] sm:$0xf0]  ;;  %v4388_v4 = vpack.c.bf16 %v112_v58, %v112_v58  ;;  %v2739_v49 = vld [vmem:[#allocation5 + $0x150] sm:$0xf0]  ;;  %v2614_v52 = vor.u32 %v3691_v43, %v2611_v44 }
  0x41   :  { %v3297_v3 = vld [vmem:[#allocation5 + $0x5a0] sm:$0xf]  ;;  %v3865_v5 = vld [vmem:[#allocation5 + $0x5ac] sm:$0xf0]  ;;  %1362 = vmatmul.bf16.vlgmr.msra.gmra.mxu3 %v4384_v57  ;;  %1368 = vmatpush.bf16.msrb.mxu0 %v3186_v60  ;;  %v3170_v9 = vor.u32 %v3833_v2, %v3169_v1  ;;  %v2595_v60 = vld [vmem:[#allocation5 + $0x30] sm:$0xf0]  ;;  %v2742_v61 = vor.u32 %v3723_v48, %v2739_v49 }
  0x42   :  { %1381 = vmatpush.bf16.msrb.mxu1 %v3314_v63  ;;  %v3298_v12 = vor.u32 %v3865_v5, %v3297_v3  ;;  %v3153_v14 = vld [vmem:[#allocation5 + $0x480] sm:$0xf]  ;;  %v3829_v15 = vld [vmem:[#allocation5 + $0x48c] sm:$0xf0]  ;;  %v3719_v63 = vld [vmem:[#allocation5 + $0x124] sm:$0xf] }
  0x43   :  { %1419 = vmatpush.bf16.msra.mxu2 %v2822_v59  ;;  %v3281_v16 = vld [vmem:[#allocation5 + $0x580] sm:$0xf]  ;;  %1336 = vmatmul.bf16.vlgmr.msra.gmra.mxu1 %v4388_v4  ;;  %v3861_v17 = vld [vmem:[#allocation5 + $0x58c] sm:$0xf0]  ;;  %v3154_v21 = vor.u32 %v3829_v15, %v3153_v14  ;;  %v3687_v59 = vld [vmem:[#allocation5 + $0x24] sm:$0xf] }
  0x44   :  { %1407 = vmatpush.bf16.msrb.mxu3 %v2678_v0  ;;  %v3282_v24 = vor.u32 %v3861_v17, %v3281_v16  ;;  %v3137_v26 = vld [vmem:[#allocation5 + $0x460] sm:$0xf]  ;;  %v3825_v27 = vld [vmem:[#allocation5 + $0x46c] sm:$0xf0]  ;;  %v2723_v0 = vld [vmem:[#allocation5 + $0x130] sm:$0xf0]  ;;  %v2598_v3 = vor.u32 %v3687_v59, %v2595_v60 }
  0x45   :  { %1369 = vmatpush.bf16.msrb.mxu0 %v3170_v9  ;;  %v3265_v28 = vld [vmem:[#allocation5 + $0x560] sm:$0xf]  ;;  %v3857_v29 = vld [vmem:[#allocation5 + $0x56c] sm:$0xf0]  ;;  %v3138_v34 = vor.u32 %v3825_v27, %v3137_v26  ;;  %v2579_v9 = vld [vmem:[#allocation5 + $0x10] sm:$0xf0]  ;;  %v2726_v14 = vor.u32 %v3719_v63, %v2723_v0 }
  0x46   :  { %1382 = vmatpush.bf16.msrb.mxu1 %v3298_v12  ;;  %v3266_v37 = vor.u32 %v3857_v29, %v3265_v28  ;;  %v3121_v39 = vld [vmem:[#allocation5 + $0x440] sm:$0xf]  ;;  %v3821_v40 = vld [vmem:[#allocation5 + $0x44c] sm:$0xf0]  ;;  %v3775_v10 = vld [vmem:[#allocation5 + $0x2e4] sm:$0xf] }
  0x47   :  { %1420 = vmatpush.bf16.msra.mxu2 %v2806_v8  ;;  %v3249_v41 = vld [vmem:[#allocation5 + $0x540] sm:$0xf]  ;;  %v3853_v42 = vld [vmem:[#allocation5 + $0x54c] sm:$0xf0]  ;;  %v3122_v47 = vor.u32 %v3821_v40, %v3121_v39  ;;  %v3683_v8 = vld [vmem:[#allocation5 + $0x4] sm:$0xf] }
  0x48   :  { %1408 = vmatpush.bf16.msrb.mxu3 %v2662_v13  ;;  %v3250_v50 = vor.u32 %v3853_v42, %v3249_v41  ;;  %v3105_v53 = vld [vmem:[#allocation5 + $0x420] sm:$0xf]  ;;  %v3817_v54 = vld [vmem:[#allocation5 + $0x42c] sm:$0xf0]  ;;  %v2947_v11 = vld [vmem:[#allocation5 + $0x2f0] sm:$0xf0] }
  0x49   :  { %1370 = vmatpush.bf16.msrb.mxu0 %v3154_v21  ;;  %v3233_v56 = vld [vmem:[#allocation5 + $0x520] sm:$0xf]  ;;  %v3849_v58 = vld [vmem:[#allocation5 + $0x52c] sm:$0xf0]  ;;  %v3106_v62 = vor.u32 %v3817_v54, %v3105_v53  ;;  %v3807_v12 = vld [vmem:[#allocation5 + $0x3e4] sm:$0xf] }
  0x4a   :  { %1383 = vmatpush.bf16.msrb.mxu1 %v3282_v24  ;;  %v3089_v1 = vld [vmem:[#allocation5 + $0x400] sm:$0xf]  ;;  %v3234_v2 = vor.u32 %v3849_v58, %v3233_v56  ;;  %v3813_v5 = vld [vmem:[#allocation5 + $0x40c] sm:$0xf0]  ;;  %v3075_v13 = vld [vmem:[#allocation5 + $0x3f0] sm:$0xf0]  ;;  %v2950_v24 = vor.u32 %v3775_v10, %v2947_v11 }
  0x4b   :  { %1421 = vmatpush.bf16.msra.mxu2 %v2790_v20  ;;  %v3217_v6 = vld [vmem:[#allocation5 + $0x500] sm:$0xf]  ;;  %v3845_v7 = vld [vmem:[#allocation5 + $0x50c] sm:$0xf0]  ;;  %v3090_v15 = vor.u32 %v3813_v5, %v3089_v1  ;;  %v3839_v16 = vld [vmem:[#allocation5 + $0x4e4] sm:$0xf]  ;;  %v2582_v20 = vor.u32 %v3683_v8, %v2579_v9 }
  0x4c   :  { %1409 = vmatpush.bf16.msrb.mxu3 %v2646_v25  ;;  %v3203_v17 = vld [vmem:[#allocation5 + $0x4f0] sm:$0xf0]  ;;  %v115_v18 = vld [vmem:[#allocation2 + $0x20] sm:$0xff]  ;;  %v3218_v19 = vor.u32 %v3845_v7, %v3217_v6  ;;  %v3715_v21 = vld [vmem:[#allocation5 + $0x104] sm:$0xf]  ;;  %v3078_v25 = vor.u32 %v3807_v12, %v3075_v13 }
  0x4d   :  { %1371 = vmatpush.bf16.msrb.mxu0 %v3138_v34  ;;  %v2707_v22 = vld [vmem:[#allocation5 + $0x110] sm:$0xf0]  ;;  %v3871_v26 = vld [vmem:[#allocation5 + $0x5e4] sm:$0xf]  ;;  %v3206_v29 = vor.u32 %v3839_v16, %v3203_v17  ;;  %v4396_v30 = vpack.c.bf16 %v115_v18, %v115_v18 }
  0x4e   :  { %1384 = vmatpush.bf16.msrb.mxu1 %v3266_v37  ;;  %3359 = vmatmul.msk.bf16.vlgmr.msrb.gmra.mxu2 %vm1311_vm0, %v4392_v45  ;;  %v116_v23 = vld [vmem:[#allocation2 + $0x28] sm:$0xff]  ;;  %v3771_v28 = vld [vmem:[#allocation5 + $0x2c4] sm:$0xf]  ;;  %v2710_v34 = vor.u32 %v3715_v21, %v2707_v22 }
  0x4f   :  { %1422 = vmatpush.bf16.msra.mxu2 %v2774_v33  ;;  %v3331_v27 = vld [vmem:[#allocation5 + $0x5f0] sm:$0xf0]  ;;  %v3803_v32 = vld [vmem:[#allocation5 + $0x3c4] sm:$0xf]  ;;  %v4398_v35 = vpack.c.bf16 %v116_v23, %v116_v23 }
  0x50   :  { %1410 = vmatpush.bf16.msrb.mxu3 %v2630_v38  ;;  %v2931_v31 = vld [vmem:[#allocation5 + $0x2d0] sm:$0xf0]  ;;  %v3835_v36 = vld [vmem:[#allocation5 + $0x4c4] sm:$0xf]  ;;  %v3334_v38 = vor.u32 %v3871_v26, %v3331_v27 }
  0x51   :  { %1372 = vmatpush.bf16.msrb.mxu0 %v3122_v47  ;;  %v3059_v33 = vld [vmem:[#allocation5 + $0x3d0] sm:$0xf0]  ;;  %v2934_v39 = vor.u32 %v3771_v28, %v2931_v31  ;;  %v3867_v41 = vld [vmem:[#allocation5 + $0x5c4] sm:$0xf] }
  0x52   :  { %1385 = vmatpush.bf16.msrb.mxu1 %v3250_v50  ;;  %v3187_v37 = vld [vmem:[#allocation5 + $0x4d0] sm:$0xf0]  ;;  %v3062_v40 = vor.u32 %v3803_v32, %v3059_v33  ;;  %v3767_v43 = vld [vmem:[#allocation5 + $0x2a4] sm:$0xf] }
  0x53   :  { %1423 = vmatpush.bf16.msra.mxu2 %v2758_v46  ;;  %v3315_v42 = vld [vmem:[#allocation5 + $0x5d0] sm:$0xf0]  ;;  %v3190_v44 = vor.u32 %v3835_v36, %v3187_v37  ;;  %v3799_v47 = vld [vmem:[#allocation5 + $0x3a4] sm:$0xf] }
  0x54   :  { %1411 = vmatpush.bf16.msrb.mxu3 %v2614_v52  ;;  %v2915_v46 = vld [vmem:[#allocation5 + $0x2b0] sm:$0xf0]  ;;  %v3831_v49 = vld [vmem:[#allocation5 + $0x4a4] sm:$0xf]  ;;  %v3318_v52 = vor.u32 %v3867_v41, %v3315_v42 }
  0x55   :  { %1373 = vmatpush.bf16.msrb.mxu0 %v3106_v62  ;;  %v3043_v48 = vld [vmem:[#allocation5 + $0x3b0] sm:$0xf0]  ;;  %v2918_v53 = vor.u32 %v3767_v43, %v2915_v46  ;;  %v3863_v56 = vld [vmem:[#allocation5 + $0x5a4] sm:$0xf] }
  0x56   :  { %1386 = vmatpush.bf16.msrb.mxu1 %v3234_v2  ;;  %v3171_v50 = vld [vmem:[#allocation5 + $0x4b0] sm:$0xf0]  ;;  %v3046_v54 = vor.u32 %v3799_v47, %v3043_v48  ;;  %v3763_v59 = vld [vmem:[#allocation5 + $0x284] sm:$0xf] }
  0x57   :  { %1424 = vmatpush.bf16.msra.mxu2 %v2742_v61  ;;  %v3299_v58 = vld [vmem:[#allocation5 + $0x5b0] sm:$0xf0]  ;;  %v3174_v60 = vor.u32 %v3831_v49, %v3171_v50  ;;  %v3795_v62 = vld [vmem:[#allocation5 + $0x384] sm:$0xf] }
  0x58   :  { %1412 = vmatpush.bf16.msrb.mxu3 %v2598_v3  ;;  %v2899_v61 = vld [vmem:[#allocation5 + $0x290] sm:$0xf0]  ;;  %v3827_v0 = vld [vmem:[#allocation5 + $0x484] sm:$0xf]  ;;  %v3302_v2 = vor.u32 %v3863_v56, %v3299_v58  ;;  %v2697_v56 = vld [vmem:[#allocation5 + $0xe8] sm:$0xf] }
  0x59   :  { %1374 = vmatpush.bf16.msrb.mxu0 %v3090_v15  ;;  %v3027_v63 = vld [vmem:[#allocation5 + $0x390] sm:$0xf0]  ;;  %v2902_v3 = vor.u32 %v3763_v59, %v2899_v61  ;;  %v3859_v6 = vld [vmem:[#allocation5 + $0x584] sm:$0xf]  ;;  %v3714_v58 = vld [vmem:[#allocation5 + $0xf4] sm:$0xf0] }
  0x5a   :  { %1387 = vmatpush.bf16.msrb.mxu1 %v3218_v19  ;;  %v3155_v1 = vld [vmem:[#allocation5 + $0x490] sm:$0xf0]  ;;  %v3030_v5 = vor.u32 %v3795_v62, %v3027_v63  ;;  %v3759_v8 = vld [vmem:[#allocation5 + $0x264] sm:$0xf]  ;;  %v2825_v59 = vld [vmem:[#allocation5 + $0x1e8] sm:$0xf] }
  0x5b   :  { %1425 = vmatpush.bf16.msra.mxu2 %v2726_v14  ;;  %v3283_v7 = vld [vmem:[#allocation5 + $0x590] sm:$0xf0]  ;;  %v3158_v9 = vor.u32 %v3827_v0, %v3155_v1  ;;  %v3791_v11 = vld [vmem:[#allocation5 + $0x364] sm:$0xf]  ;;  %v3746_v61 = vld [vmem:[#allocation5 + $0x1f4] sm:$0xf0] }
  0x5c   :  { %1413 = vmatpush.bf16.msrb.mxu3 %v2582_v20  ;;  %1375 = vmatmul.bf16.vlgmr.msrb.gmra.mxu0 %v4396_v30  ;;  %v2883_v10 = vld [vmem:[#allocation5 + $0x270] sm:$0xf0]  ;;  %v3823_v13 = vld [vmem:[#allocation5 + $0x464] sm:$0xf]  ;;  %v3286_v15 = vor.u32 %v3859_v6, %v3283_v7  ;;  %v2698_v6 = vor.u32 %v3714_v58, %v2697_v56  ;;  %v3081_v7 = vld [vmem:[#allocation5 + $0x3e8] sm:$0xf] }
  0x5d   :  { %1432 = vmatpush.bf16.msra.mxu0 %v2950_v24  ;;  %1388 = vmatmul.bf16.vlgmr.msrb.gmra.mxu1 %v4398_v35  ;;  %v3011_v12 = vld [vmem:[#allocation5 + $0x370] sm:$0xf0]  ;;  %v2886_v16 = vor.u32 %v3759_v8, %v2883_v10  ;;  %v3855_v18 = vld [vmem:[#allocation5 + $0x564] sm:$0xf]  ;;  %v3810_v8 = vld [vmem:[#allocation5 + $0x3f4] sm:$0xf0]  ;;  %v2826_v10 = vor.u32 %v3746_v61, %v2825_v59 }
  0x5e   :  { %1445 = vmatpush.bf16.msra.mxu1 %v3078_v25  ;;  %v3139_v14 = vld [vmem:[#allocation5 + $0x470] sm:$0xf0]  ;;  %v3014_v17 = vor.u32 %v3791_v11, %v3011_v12  ;;  %v3755_v20 = vld [vmem:[#allocation5 + $0x244] sm:$0xf]  ;;  %v3710_v11 = vld [vmem:[#allocation5 + $0xd4] sm:$0xf0] }
  0x5f   :  { %1426 = vmatpush.bf16.msra.mxu2 %v2710_v34  ;;  %1414 = vmatmul.bf16.vlgmr.msrb.gmra.mxu3 %v4382_v55  ;;  %v3267_v19 = vld [vmem:[#allocation5 + $0x570] sm:$0xf0]  ;;  %v3142_v21 = vor.u32 %v3823_v13, %v3139_v14  ;;  %v3787_v23 = vld [vmem:[#allocation5 + $0x344] sm:$0xf]  ;;  %v2953_v13 = vld [vmem:[#allocation5 + $0x2e8] sm:$0xf] }
  0x60   :  { %1458 = vmatpush.bf16.msra.mxu3 %v3206_v29  ;;  %v2867_v22 = vld [vmem:[#allocation5 + $0x250] sm:$0xf0]  ;;  %v3819_v25 = vld [vmem:[#allocation5 + $0x444] sm:$0xf]  ;;  %v3270_v27 = vor.u32 %v3855_v18, %v3267_v19  ;;  %v3778_v14 = vld [vmem:[#allocation5 + $0x2f4] sm:$0xf0]  ;;  %v3082_v18 = vor.u32 %v3810_v8, %v3081_v7 }
  0x61   :  { %1433 = vmatpush.bf16.msra.mxu0 %v2934_v39  ;;  %v2995_v24 = vld [vmem:[#allocation5 + $0x350] sm:$0xf0]  ;;  %v2870_v28 = vor.u32 %v3755_v20, %v2867_v22  ;;  %v3851_v31 = vld [vmem:[#allocation5 + $0x544] sm:$0xf]  ;;  %v3065_v20 = vld [vmem:[#allocation5 + $0x3c8] sm:$0xf] }
  0x62   :  { %1446 = vmatpush.bf16.msra.mxu1 %v3062_v40  ;;  %1427 = vmatmul.bf16.vlgmr.msra.gmra.mxu2 %v4388_v4  ;;  %v3123_v26 = vld [vmem:[#allocation5 + $0x450] sm:$0xf0]  ;;  %v2998_v29 = vor.u32 %v3787_v23, %v2995_v24  ;;  %v3751_v33 = vld [vmem:[#allocation5 + $0x224] sm:$0xf]  ;;  %v2665_v22 = vld [vmem:[#allocation5 + $0xa8] sm:$0xf]  ;;  %v2954_v23 = vor.u32 %v3778_v14, %v2953_v13 }
  0x63   :  { %1471 = vmatpush.bf16.msrb.mxu2 %v3334_v38  ;;  %v3251_v32 = vld [vmem:[#allocation5 + $0x550] sm:$0xf0]  ;;  %v3126_v34 = vor.u32 %v3819_v25, %v3123_v26  ;;  %v3783_v37 = vld [vmem:[#allocation5 + $0x324] sm:$0xf]  ;;  %v3706_v25 = vld [vmem:[#allocation5 + $0xb4] sm:$0xf0] }
  0x64   :  { %1459 = vmatpush.bf16.msra.mxu3 %v3190_v44  ;;  %v2851_v36 = vld [vmem:[#allocation5 + $0x230] sm:$0xf0]  ;;  %v3815_v39 = vld [vmem:[#allocation5 + $0x424] sm:$0xf]  ;;  %v3254_v41 = vor.u32 %v3851_v31, %v3251_v32  ;;  %v2937_v26 = vld [vmem:[#allocation5 + $0x2c8] sm:$0xf]  ;;  %v2666_v32 = vor.u32 %v3706_v25, %v2665_v22 }
  0x65   :  { %1434 = vmatpush.bf16.msra.mxu0 %v2918_v53  ;;  %v2979_v38 = vld [vmem:[#allocation5 + $0x330] sm:$0xf0]  ;;  %v3847_v42 = vld [vmem:[#allocation5 + $0x524] sm:$0xf]  ;;  %v2854_v46 = vor.u32 %v3751_v33, %v2851_v36  ;;  %v3049_v33 = vld [vmem:[#allocation5 + $0x3a8] sm:$0xf] }
  0x66   :  { %1447 = vmatpush.bf16.msra.mxu1 %v3046_v54  ;;  %v3107_v40 = vld [vmem:[#allocation5 + $0x430] sm:$0xf0]  ;;  %v3747_v44 = vld [vmem:[#allocation5 + $0x204] sm:$0xf]  ;;  %v2982_v47 = vor.u32 %v3783_v37, %v2979_v38  ;;  %v2649_v36 = vld [vmem:[#allocation5 + $0x88] sm:$0xf] }
  0x67   :  { %1472 = vmatpush.bf16.msrb.mxu2 %v3318_v52  ;;  %v3235_v43 = vld [vmem:[#allocation5 + $0x530] sm:$0xf0]  ;;  %v3779_v49 = vld [vmem:[#allocation5 + $0x304] sm:$0xf]  ;;  %v3110_v52 = vor.u32 %v3815_v39, %v3107_v40  ;;  %v3702_v39 = vld [vmem:[#allocation5 + $0x94] sm:$0xf0] }
  0x68   :  { %1460 = vmatpush.bf16.msra.mxu3 %v3174_v60  ;;  %v2835_v48 = vld [vmem:[#allocation5 + $0x210] sm:$0xf0]  ;;  %v3811_v53 = vld [vmem:[#allocation5 + $0x404] sm:$0xf]  ;;  %v3238_v60 = vor.u32 %v3847_v42, %v3235_v43  ;;  %v2921_v40 = vld [vmem:[#allocation5 + $0x2a8] sm:$0xf] }
  0x69   :  { %1435 = vmatpush.bf16.msra.mxu0 %v2902_v3  ;;  %v2963_v50 = vld [vmem:[#allocation5 + $0x310] sm:$0xf0]  ;;  %v3875_v62 = vld [vmem:[#allocation5 + $0x604] sm:$0xf]  ;;  %v2838_v0 = vor.u32 %v3747_v44, %v2835_v48  ;;  %v2777_v42 = vld [vmem:[#allocation5 + $0x188] sm:$0xf] }
  0x6a   :  { %1448 = vmatpush.bf16.msra.mxu1 %v3030_v5  ;;  %v3091_v54 = vld [vmem:[#allocation5 + $0x410] sm:$0xf0]  ;;  %v2966_v1 = vor.u32 %v3779_v49, %v2963_v50  ;;  %v3734_v43 = vld [vmem:[#allocation5 + $0x194] sm:$0xf0]  ;;  %v2633_v49 = vld [vmem:[#allocation5 + $0x68] sm:$0xf] }
  0x6b   :  { %1473 = vmatpush.bf16.msrb.mxu2 %v3302_v2  ;;  %v3347_v63 = vld [vmem:[#allocation5 + $0x610] sm:$0xf0]  ;;  %v3843_v2 = vld [vmem:[#allocation5 + $0x504] sm:$0xf]  ;;  %v3094_v5 = vor.u32 %v3811_v53, %v3091_v54  ;;  %v3798_v48 = vld [vmem:[#allocation5 + $0x394] sm:$0xf0] }
  0x6c   :  { %1461 = vmatpush.bf16.msra.mxu3 %v3158_v9  ;;  %v3219_v3 = vld [vmem:[#allocation5 + $0x510] sm:$0xf0]  ;;  %v2681_v9 = vld [vmem:[#allocation5 + $0xc8] sm:$0xf]  ;;  %v3350_v12 = vor.u32 %v3875_v62, %v3347_v63  ;;  %v3698_v53 = vld [vmem:[#allocation5 + $0x74] sm:$0xf0] }
  0x6d   :  { %1436 = vmatpush.bf16.msra.mxu0 %v2886_v16  ;;  %v2809_v16 = vld [vmem:[#allocation5 + $0x1c8] sm:$0xf]  ;;  %v2682_v19 = vor.u32 %v3710_v11, %v2681_v9  ;;  %v3766_v56 = vld [vmem:[#allocation5 + $0x294] sm:$0xf0]  ;;  %v2634_v61 = vor.u32 %v3698_v53, %v2633_v49 }
  0x6e   :  { %1449 = vmatpush.bf16.msra.mxu1 %v3014_v17  ;;  %v3742_v17 = vld [vmem:[#allocation5 + $0x1d4] sm:$0xf0]  ;;  %v2905_v54 = vld [vmem:[#allocation5 + $0x288] sm:$0xf] }
  0x6f   :  { %1474 = vmatpush.bf16.msrb.mxu2 %v3286_v15  ;;  %v3222_v15 = vor.u32 %v3843_v2, %v3219_v3  ;;  %v2810_v24 = vor.u32 %v3742_v17, %v2809_v16  ;;  %v2761_v58 = vld [vmem:[#allocation5 + $0x168] sm:$0xf]  ;;  %v3730_v59 = vld [vmem:[#allocation5 + $0x174] sm:$0xf0] }
  0x70   :  { %1462 = vmatpush.bf16.msra.mxu3 %v3142_v21  ;;  %v3806_v21 = vld [vmem:[#allocation5 + $0x3d4] sm:$0xf0]  ;;  %v3017_v62 = vld [vmem:[#allocation5 + $0x368] sm:$0xf]  ;;  %v2762_v2 = vor.u32 %v3730_v59, %v2761_v58 }
  0x71   :  { %1437 = vmatpush.bf16.msra.mxu0 %v2870_v28  ;;  %v2793_v28 = vld [vmem:[#allocation5 + $0x1a8] sm:$0xf]  ;;  %v3066_v31 = vor.u32 %v3806_v21, %v3065_v20  ;;  %v3794_v63 = vld [vmem:[#allocation5 + $0x374] sm:$0xf0] }
  0x72   :  { %1450 = vmatpush.bf16.msra.mxu1 %v2998_v29  ;;  %v3738_v29 = vld [vmem:[#allocation5 + $0x1b4] sm:$0xf0]  ;;  %v2745_v7 = vld [vmem:[#allocation5 + $0x148] sm:$0xf]  ;;  %v3018_v9 = vor.u32 %v3794_v63, %v3017_v62 }
  0x73   :  { %1475 = vmatpush.bf16.msrb.mxu2 %v3270_v27  ;;  %v3774_v27 = vld [vmem:[#allocation5 + $0x2d4] sm:$0xf0]  ;;  %v2794_v38 = vor.u32 %v3738_v29, %v2793_v28  ;;  %v3001_v11 = vld [vmem:[#allocation5 + $0x348] sm:$0xf] }
  0x74   :  { %1463 = vmatpush.bf16.msra.mxu3 %v3126_v34  ;;  %v3802_v34 = vld [vmem:[#allocation5 + $0x3b4] sm:$0xf0]  ;;  %v2938_v37 = vor.u32 %v3774_v27, %v2937_v26  ;;  %v2601_v13 = vld [vmem:[#allocation5 + $0x28] sm:$0xf] }
  0x75   :  { %1438 = vmatpush.bf16.msra.mxu0 %v2854_v46  ;;  %v3050_v44 = vor.u32 %v3802_v34, %v3049_v33  ;;  %v2650_v46 = vor.u32 %v3702_v39, %v2649_v36  ;;  %v3694_v3 = vld [vmem:[#allocation5 + $0x54] sm:$0xf0]  ;;  %v2873_v17 = vld [vmem:[#allocation5 + $0x248] sm:$0xf] }
  0x76   :  { %1451 = vmatpush.bf16.msra.mxu1 %v2982_v47  ;;  %v3033_v47 = vld [vmem:[#allocation5 + $0x388] sm:$0xf]  ;;  %v3726_v8 = vld [vmem:[#allocation5 + $0x154] sm:$0xf0] }
  0x77   :  { %1476 = vmatpush.bf16.msrb.mxu2 %v3254_v41  ;;  %v3770_v41 = vld [vmem:[#allocation5 + $0x2b4] sm:$0xf0]  ;;  %v2985_v22 = vld [vmem:[#allocation5 + $0x328] sm:$0xf] }
  0x78   :  { %1464 = vmatpush.bf16.msra.mxu3 %v3110_v52  ;;  %v2922_v50 = vor.u32 %v3770_v41, %v2921_v40  ;;  %v2778_v52 = vor.u32 %v3734_v43, %v2777_v42  ;;  %v3690_v16 = vld [vmem:[#allocation5 + $0x34] sm:$0xf0]  ;;  %v2585_v25 = vld [vmem:[#allocation5 + $0x8] sm:$0xf] }
  0x79   :  { %1439 = vmatpush.bf16.msra.mxu0 %v2838_v0  ;;  %v2617_v0 = vld [vmem:[#allocation5 + $0x48] sm:$0xf]  ;;  %v3722_v20 = vld [vmem:[#allocation5 + $0x134] sm:$0xf0] }
  0x7a   :  { %1452 = vmatpush.bf16.msra.mxu1 %v2966_v1  ;;  %v2906_v1 = vor.u32 %v3766_v56, %v2905_v54  ;;  %v3686_v26 = vld [vmem:[#allocation5 + $0x14] sm:$0xf0]  ;;  %v2713_v29 = vld [vmem:[#allocation5 + $0x108] sm:$0xf] }
  0x7b   :  { %1477 = vmatpush.bf16.msrb.mxu2 %v3238_v60  ;;  %v3034_v60 = vor.u32 %v3798_v48, %v3033_v47  ;;  %v3718_v33 = vld [vmem:[#allocation5 + $0x114] sm:$0xf0]  ;;  %v3209_v34 = vld [vmem:[#allocation5 + $0x4e8] sm:$0xf]  ;;  %v2586_v41 = vor.u32 %v3686_v26, %v2585_v25  ;;  %v3700_v25 = vld [vmem:[#allocation5 + $0x8c] sm:$0xf] }
  0x7c   :  { %1465 = vmatpush.bf16.msra.mxu3 %v3094_v5  ;;  %1440 = vmatmul.bf16.vlgmr.msra.gmra.mxu0 %v4380_v51  ;;  %v2889_v5 = vld [vmem:[#allocation5 + $0x268] sm:$0xf]  ;;  %v3842_v36 = vld [vmem:[#allocation5 + $0x4f4] sm:$0xf0]  ;;  %v2714_v47 = vor.u32 %v3718_v33, %v2713_v29  ;;  %v3736_v29 = vld [vmem:[#allocation5 + $0x1ac] sm:$0xf] }
  0x7d   :  { %1491 = vmatpush.bf16.msrb.mxu0 %v3350_v12  ;;  %1453 = vmatmul.bf16.vlgmr.msra.gmra.mxu1 %v4384_v57  ;;  %v3790_v12 = vld [vmem:[#allocation5 + $0x354] sm:$0xf0]  ;;  %v2969_v40 = vld [vmem:[#allocation5 + $0x308] sm:$0xf]  ;;  %v3210_v48 = vor.u32 %v3842_v36, %v3209_v34 }
  0x7e   :  { %1497 = vmatpush.bf16.msrb.mxu1 %v2698_v6  ;;  %v3762_v6 = vld [vmem:[#allocation5 + $0x274] sm:$0xf0]  ;;  %v3002_v21 = vor.u32 %v3790_v12, %v3001_v11  ;;  %v3193_v49 = vld [vmem:[#allocation5 + $0x4c8] sm:$0xf] }
  0x7f   :  { %1478 = vmatpush.bf16.msrb.mxu2 %v3222_v15  ;;  %1466 = vmatmul.bf16.vlgmr.msra.gmra.mxu3 %v4396_v30  ;;  %v2890_v14 = vor.u32 %v3762_v6, %v2889_v5  ;;  %v2746_v15 = vor.u32 %v3726_v8, %v2745_v7  ;;  %v3874_v39 = vld [vmem:[#allocation5 + $0x5f4] sm:$0xf0]  ;;  %v3353_v56 = vld [vmem:[#allocation5 + $0x608] sm:$0xf]  ;;  %v3744_v5 = vld [vmem:[#allocation5 + $0x1ec] sm:$0xf] }
  0x80   :  { %1510 = vmatpush.bf16.msrb.mxu3 %v2826_v10  ;;  %v2618_v10 = vor.u32 %v3694_v3, %v2617_v0  ;;  %v3782_v42 = vld [vmem:[#allocation5 + $0x314] sm:$0xf0]  ;;  %v3708_v0 = vld [vmem:[#allocation5 + $0xcc] sm:$0xf]  ;;  %v2827_v6 = vld [vmem:[#allocation5 + $0x1f8] sm:$0xf0] }
  0x81   :  { %1523 = vmatpush.bf16.msra.mxu0 %v2954_v23  ;;  %v2602_v23 = vor.u32 %v3690_v16, %v2601_v13  ;;  %v3838_v54 = vld [vmem:[#allocation5 + $0x4d4] sm:$0xf0]  ;;  %v2970_v59 = vor.u32 %v3782_v42, %v2969_v40  ;;  %v3177_v8 = vld [vmem:[#allocation5 + $0x4a8] sm:$0xf]  ;;  %v3704_v13 = vld [vmem:[#allocation5 + $0xac] sm:$0xf] }
  0x82   :  { %1498 = vmatpush.bf16.msrb.mxu1 %v2682_v19  ;;  %1479 = vmatmul.bf16.vlgmr.msrb.gmra.mxu2 %v4398_v35  ;;  %v2729_v19 = vld [vmem:[#allocation5 + $0x128] sm:$0xf]  ;;  %v3878_v58 = vld [vmem:[#allocation5 + $0x614] sm:$0xf0]  ;;  %v2667_v16 = vld [vmem:[#allocation5 + $0xb8] sm:$0xf0] }
  0x83   :  { %1536 = vmatpush.bf16.msra.mxu2 %v3082_v18  ;;  %v3758_v18 = vld [vmem:[#allocation5 + $0x254] sm:$0xf0]  ;;  %v2730_v28 = vor.u32 %v3722_v20, %v2729_v19  ;;  %v3354_v3 = vor.u32 %v3878_v58, %v3353_v56  ;;  %v3161_v20 = vld [vmem:[#allocation5 + $0x488] sm:$0xf]  ;;  %v2635_v42 = vld [vmem:[#allocation5 + $0x78] sm:$0xf0] }
  0x84   :  { %1511 = vmatpush.bf16.msrb.mxu3 %v2810_v24  ;;  %v3786_v24 = vld [vmem:[#allocation5 + $0x334] sm:$0xf0]  ;;  %v2874_v27 = vor.u32 %v3758_v18, %v2873_v17  ;;  %v3740_v17 = vld [vmem:[#allocation5 + $0x1cc] sm:$0xf]  ;;  %v2811_v18 = vld [vmem:[#allocation5 + $0x1d8] sm:$0xf0] }
  0x85   :  { %1524 = vmatpush.bf16.msra.mxu0 %v2938_v37  ;;  %v2986_v37 = vor.u32 %v3786_v24, %v2985_v22  ;;  %v3866_v11 = vld [vmem:[#allocation5 + $0x5b4] sm:$0xf0]  ;;  %v3289_v22 = vld [vmem:[#allocation5 + $0x588] sm:$0xf]  ;;  %v2670_v24 = vor.u32 %v3704_v13, %v2667_v16  ;;  %v2814_v26 = vor.u32 %v3740_v17, %v2811_v18  ;;  %v2619_v58 = vld [vmem:[#allocation5 + $0x58] sm:$0xf0] }
  0x86   :  { %1499 = vmatpush.bf16.msrb.mxu1 %v2666_v32  ;;  %v3754_v32 = vld [vmem:[#allocation5 + $0x234] sm:$0xf0]  ;;  %v3145_v33 = vld [vmem:[#allocation5 + $0x468] sm:$0xf]  ;;  %v2955_v16 = vld [vmem:[#allocation5 + $0x2f8] sm:$0xf0] }
  0x87   :  { %1537 = vmatpush.bf16.msra.mxu2 %v3066_v31  ;;  %v2857_v31 = vld [vmem:[#allocation5 + $0x228] sm:$0xf]  ;;  %v3826_v34 = vld [vmem:[#allocation5 + $0x474] sm:$0xf0]  ;;  %v3808_v18 = vld [vmem:[#allocation5 + $0x3ec] sm:$0xf] }
  0x88   :  { %1512 = vmatpush.bf16.msrb.mxu3 %v2794_v38  ;;  %v3337_v38 = vld [vmem:[#allocation5 + $0x5e8] sm:$0xf]  ;;  %v2858_v43 = vor.u32 %v3754_v32, %v2857_v31  ;;  %v2795_v31 = vld [vmem:[#allocation5 + $0x1b8] sm:$0xf0] }
  0x89   :  { %1525 = vmatpush.bf16.msra.mxu0 %v2922_v50  ;;  %v2841_v50 = vld [vmem:[#allocation5 + $0x208] sm:$0xf]  ;;  %v3338_v53 = vor.u32 %v3874_v39, %v3337_v38  ;;  %v3696_v39 = vld [vmem:[#allocation5 + $0x6c] sm:$0xf]  ;;  %v2798_v40 = vor.u32 %v3736_v29, %v2795_v31  ;;  %v2939_v31 = vld [vmem:[#allocation5 + $0x2d8] sm:$0xf0] }
  0x8a   :  { %1500 = vmatpush.bf16.msrb.mxu1 %v2650_v46  ;;  %v2699_v46 = vld [vmem:[#allocation5 + $0xf8] sm:$0xf0]  ;;  %v3273_v36 = vld [vmem:[#allocation5 + $0x568] sm:$0xf] }
  0x8b   :  { %1538 = vmatpush.bf16.msra.mxu2 %v3050_v44  ;;  %v3712_v44 = vld [vmem:[#allocation5 + $0xec] sm:$0xf]  ;;  %v3225_v13 = vld [vmem:[#allocation5 + $0x508] sm:$0xf] }
  0x8c   :  { %1513 = vmatpush.bf16.msrb.mxu3 %v2778_v52  ;;  %3360 = vmatmul.msk.bf16.vlgmr.msrb.gmra.mxu0 %vm1311_vm0, %v4392_v45  ;;  %v3750_v52 = vld [vmem:[#allocation5 + $0x214] sm:$0xf0]  ;;  %v2702_v62 = vor.u32 %v3712_v44, %v2699_v46  ;;  %v2779_v44 = vld [vmem:[#allocation5 + $0x198] sm:$0xf0] }
  0x8d   :  { %1526 = vmatpush.bf16.msra.mxu0 %v2906_v1  ;;  %v2842_v63 = vor.u32 %v3750_v52, %v2841_v50  ;;  %v3194_v1 = vor.u32 %v3838_v54, %v3193_v49  ;;  %v3257_v49 = vld [vmem:[#allocation5 + $0x548] sm:$0xf]  ;;  %v3854_v50 = vld [vmem:[#allocation5 + $0x554] sm:$0xf0]  ;;  %v2638_v52 = vor.u32 %v3696_v39, %v2635_v42  ;;  %v3836_v39 = vld [vmem:[#allocation5 + $0x4cc] sm:$0xf] }
  0x8e   :  { %1501 = vmatpush.bf16.msrb.mxu1 %v2634_v61  ;;  %v3870_v61 = vld [vmem:[#allocation5 + $0x5d4] sm:$0xf0]  ;;  %v3195_v42 = vld [vmem:[#allocation5 + $0x4d8] sm:$0xf0] }
  0x8f   :  { %1539 = vmatpush.bf16.msra.mxu2 %v3034_v60  ;;  %v3321_v60 = vld [vmem:[#allocation5 + $0x5c8] sm:$0xf] }
  0x90   :  { %1514 = vmatpush.bf16.msrb.mxu3 %v2762_v2  ;;  %v2683_v2 = vld [vmem:[#allocation5 + $0xd8] sm:$0xf0]  ;;  %v3322_v7 = vor.u32 %v3870_v61, %v3321_v60  ;;  %v3258_v61 = vor.u32 %v3854_v50, %v3257_v49 }
  0x91   :  { %1527 = vmatpush.bf16.msra.mxu0 %v2890_v14  ;;  %v2686_v12 = vor.u32 %v3708_v0, %v2683_v2  ;;  %v2830_v14 = vor.u32 %v3744_v5, %v2827_v6  ;;  %v2763_v60 = vld [vmem:[#allocation5 + $0x178] sm:$0xf0]  ;;  %v3241_v0 = vld [vmem:[#allocation5 + $0x528] sm:$0xf] }
  0x92   :  { %1502 = vmatpush.bf16.msrb.mxu1 %v2618_v10  ;;  %v3305_v10 = vld [vmem:[#allocation5 + $0x5a8] sm:$0xf]  ;;  %v2715_v49 = vld [vmem:[#allocation5 + $0x118] sm:$0xf0] }
  0x93   :  { %1540 = vmatpush.bf16.msra.mxu2 %v3018_v9  ;;  %v3834_v9 = vld [vmem:[#allocation5 + $0x4b4] sm:$0xf0]  ;;  %v3306_v19 = vor.u32 %v3866_v11, %v3305_v10  ;;  %v3097_v11 = vld [vmem:[#allocation5 + $0x408] sm:$0xf]  ;;  %v3051_v50 = vld [vmem:[#allocation5 + $0x3b8] sm:$0xf0] }
  0x94   :  { %1515 = vmatpush.bf16.msrb.mxu3 %v2746_v15  ;;  %v3178_v15 = vor.u32 %v3834_v9, %v3177_v8  ;;  %v3724_v8 = vld [vmem:[#allocation5 + $0x14c] sm:$0xf]  ;;  %v2747_v9 = vld [vmem:[#allocation5 + $0x158] sm:$0xf0] }
  0x95   :  { %1528 = vmatpush.bf16.msra.mxu0 %v2874_v27 }
  0x96   :  { %1503 = vmatpush.bf16.msrb.mxu1 %v2602_v23  ;;  %v3862_v23 = vld [vmem:[#allocation5 + $0x594] sm:$0xf0] }
  0x97   :  { %1541 = vmatpush.bf16.msra.mxu2 %v3002_v21  ;;  %v3830_v21 = vld [vmem:[#allocation5 + $0x494] sm:$0xf0]  ;;  %v3290_v32 = vor.u32 %v3862_v23, %v3289_v22  ;;  %v3684_v22 = vld [vmem:[#allocation5 + $0xc] sm:$0xf]  ;;  %v2587_v23 = vld [vmem:[#allocation5 + $0x18] sm:$0xf0] }
  0x98   :  { %1516 = vmatpush.bf16.msrb.mxu3 %v2730_v28  ;;  %v3162_v27 = vor.u32 %v3830_v21, %v3161_v20  ;;  %v2651_v28 = vld [vmem:[#allocation5 + $0x98] sm:$0xf0]  ;;  %v2750_v20 = vor.u32 %v3724_v8, %v2747_v9  ;;  %v3828_v8 = vld [vmem:[#allocation5 + $0x48c] sm:$0xf] }
  0x99   :  { %1529 = vmatpush.bf16.msra.mxu0 %v2858_v43  ;;  %v2654_v38 = vor.u32 %v3700_v25, %v2651_v28  ;;  %v3732_v43 = vld [vmem:[#allocation5 + $0x18c] sm:$0xf]  ;;  %v3163_v9 = vld [vmem:[#allocation5 + $0x498] sm:$0xf0] }
  0x9a   :  { %1504 = vmatpush.bf16.msrb.mxu1 %v2586_v41  ;;  %v3146_v41 = vor.u32 %v3826_v34, %v3145_v33  ;;  %v2782_v54 = vor.u32 %v3732_v43, %v2779_v44  ;;  %v3772_v28 = vld [vmem:[#allocation5 + $0x2cc] sm:$0xf]  ;;  %v2731_v33 = vld [vmem:[#allocation5 + $0x138] sm:$0xf0]  ;;  %v2590_v34 = vor.u32 %v3684_v22, %v2587_v23 }
  0x9b   :  { %1542 = vmatpush.bf16.msra.mxu2 %v2986_v37  ;;  %v3858_v37 = vld [vmem:[#allocation5 + $0x574] sm:$0xf0]  ;;  %v3768_v43 = vld [vmem:[#allocation5 + $0x2ac] sm:$0xf]  ;;  %v2923_v44 = vld [vmem:[#allocation5 + $0x2b8] sm:$0xf0] }
  0x9c   :  { %1517 = vmatpush.bf16.msrb.mxu3 %v2714_v47  ;;  %v3274_v46 = vor.u32 %v3858_v37, %v3273_v36  ;;  %v3129_v47 = vld [vmem:[#allocation5 + $0x448] sm:$0xf]  ;;  %v3804_v36 = vld [vmem:[#allocation5 + $0x3cc] sm:$0xf]  ;;  %v3067_v37 = vld [vmem:[#allocation5 + $0x3d8] sm:$0xf0] }
  0x9d   :  { %1505 = vmatmul.bf16.vlgmr.msrb.gmra.mxu1 %v4382_v55  ;;  %1530 = vmatpush.bf16.msra.mxu0 %v2842_v63  ;;  %v3818_v63 = vld [vmem:[#allocation5 + $0x434] sm:$0xf0] }
  0x9e   :  { %1549 = vmatpush.bf16.msra.mxu1 %v3210_v48  ;;  %v3822_v48 = vld [vmem:[#allocation5 + $0x454] sm:$0xf0] }
  0x9f   :  { %1543 = vmatpush.bf16.msra.mxu2 %v2970_v59  ;;  %1518 = vmatmul.bf16.vlgmr.msrb.gmra.mxu3 %v4388_v4  ;;  %v3130_v56 = vor.u32 %v3822_v48, %v3129_v47  ;;  %v3728_v59 = vld [vmem:[#allocation5 + $0x16c] sm:$0xf] }
  0xa0   :  { %1562 = vmatpush.bf16.msra.mxu3 %v3338_v53  ;;  %1531 = vmatmul.bf16.vlgmr.msra.gmra.mxu0 %v4380_v51  ;;  %v3692_v53 = vld [vmem:[#allocation5 + $0x4c] sm:$0xf]  ;;  %v2766_v5 = vor.u32 %v3728_v59, %v2763_v60  ;;  %v3179_v60 = vld [vmem:[#allocation5 + $0x4b8] sm:$0xf0] }
  0xa1   :  { %1582 = vmatpush.bf16.msrb.mxu0 %v3354_v3  ;;  %v2622_v2 = vor.u32 %v3692_v53, %v2619_v58  ;;  %v3688_v3 = vld [vmem:[#allocation5 + $0x2c] sm:$0xf]  ;;  %v3339_v53 = vld [vmem:[#allocation5 + $0x5f8] sm:$0xf0] }
  0xa2   :  { %1550 = vmatpush.bf16.msra.mxu1 %v3194_v1  ;;  %1544 = vmatmul.bf16.vlgmr.msra.gmra.mxu2 %v4384_v57  ;;  %v3850_v1 = vld [vmem:[#allocation5 + $0x534] sm:$0xf0]  ;;  %v3800_v47 = vld [vmem:[#allocation5 + $0x3ac] sm:$0xf] }
  0xa3   :  { %1588 = vmatpush.bf16.msrb.mxu2 %v2702_v62  ;;  %v3113_v62 = vld [vmem:[#allocation5 + $0x428] sm:$0xf]  ;;  %v3242_v10 = vor.u32 %v3850_v1, %v3241_v0  ;;  %v3716_v48 = vld [vmem:[#allocation5 + $0x10c] sm:$0xf]  ;;  %v2907_v0 = vld [vmem:[#allocation5 + $0x298] sm:$0xf0] }
  0xa4   :  { %1563 = vmatpush.bf16.msra.mxu3 %v3322_v7  ;;  %v3114_v6 = vor.u32 %v3818_v63, %v3113_v62  ;;  %v2603_v7 = vld [vmem:[#allocation5 + $0x38] sm:$0xf0]  ;;  %v2718_v58 = vor.u32 %v3716_v48, %v2715_v49  ;;  %v3832_v59 = vld [vmem:[#allocation5 + $0x4ac] sm:$0xf] }
  0xa5   :  { %1601 = vmatpush.bf16.msra.mxu0 %v2830_v14  ;;  %v3846_v14 = vld [vmem:[#allocation5 + $0x514] sm:$0xf0]  ;;  %v2606_v17 = vor.u32 %v3688_v3, %v2603_v7  ;;  %v3764_v63 = vld [vmem:[#allocation5 + $0x28c] sm:$0xf] }
  0xa6   :  { %1551 = vmatpush.bf16.msra.mxu1 %v3178_v15  ;;  %v3776_v15 = vld [vmem:[#allocation5 + $0x2ec] sm:$0xf]  ;;  %v2910_v7 = vor.u32 %v3764_v63, %v2907_v0  ;;  %v3259_v0 = vld [vmem:[#allocation5 + $0x558] sm:$0xf0] }
  0xa7   :  { %1589 = vmatpush.bf16.msrb.mxu2 %v2686_v12  ;;  %v3814_v12 = vld [vmem:[#allocation5 + $0x414] sm:$0xf0]  ;;  %v2958_v25 = vor.u32 %v3776_v15, %v2955_v16  ;;  %v3796_v1 = vld [vmem:[#allocation5 + $0x38c] sm:$0xf]  ;;  %v3019_v15 = vld [vmem:[#allocation5 + $0x378] sm:$0xf0] }
  0xa8   :  { %1564 = vmatpush.bf16.msra.mxu3 %v3306_v19  ;;  %v3083_v19 = vld [vmem:[#allocation5 + $0x3f8] sm:$0xf0]  ;;  %v3098_v21 = vor.u32 %v3814_v12, %v3097_v11  ;;  %v3868_v3 = vld [vmem:[#allocation5 + $0x5cc] sm:$0xf] }
  0xa9   :  { %1602 = vmatpush.bf16.msra.mxu0 %v2814_v26  ;;  %v3840_v26 = vld [vmem:[#allocation5 + $0x4ec] sm:$0xf]  ;;  %v3086_v29 = vor.u32 %v3808_v18, %v3083_v19  ;;  %v3166_v18 = vor.u32 %v3828_v8, %v3163_v9  ;;  %v3099_v9 = vld [vmem:[#allocation5 + $0x418] sm:$0xf0] }
  0xaa   :  { %1552 = vmatpush.bf16.msra.mxu1 %v3162_v27  ;;  %v3211_v27 = vld [vmem:[#allocation5 + $0x4f8] sm:$0xf0]  ;;  %v3760_v12 = vld [vmem:[#allocation5 + $0x26c] sm:$0xf] }
  0xab   :  { %1590 = vmatpush.bf16.msrb.mxu2 %v2670_v24  ;;  %v3226_v24 = vor.u32 %v3846_v14, %v3225_v13  ;;  %v3792_v13 = vld [vmem:[#allocation5 + $0x36c] sm:$0xf] }
  0xac   :  { %1565 = vmatpush.bf16.msra.mxu3 %v3290_v32  ;;  %v3720_v32 = vld [vmem:[#allocation5 + $0x12c] sm:$0xf]  ;;  %v3022_v22 = vor.u32 %v3792_v13, %v3019_v15 }
  0xad   :  { %1603 = vmatpush.bf16.msra.mxu0 %v2798_v40  ;;  %v2942_v40 = vor.u32 %v3772_v28, %v2939_v31  ;;  %v3864_v16 = vld [vmem:[#allocation5 + $0x5ac] sm:$0xf]  ;;  %v3003_v28 = vld [vmem:[#allocation5 + $0x358] sm:$0xf0] }
  0xae   :  { %1553 = vmatpush.bf16.msra.mxu1 %v3146_v41  ;;  %v2734_v41 = vor.u32 %v3720_v32, %v2731_v33  ;;  %v3291_v31 = vld [vmem:[#allocation5 + $0x598] sm:$0xf0]  ;;  %v4424_v33 = vld [vmem:[#allocation7] sm:$0xf]  ;;  %v3852_v63 = vld [vmem:[#allocation5 + $0x54c] sm:$0xf] }
  0xaf   :  { %1591 = vmatpush.bf16.msrb.mxu2 %v2654_v38  ;;  %v3214_v38 = vor.u32 %v3840_v26, %v3211_v27  ;;  %v3788_v26 = vld [vmem:[#allocation5 + $0x34c] sm:$0xf] }
  0xb0   :  { %1566 = vmatpush.bf16.msra.mxu3 %v3274_v46  ;;  %3361 = vmatmul.msk.bf16.vlgmr.msrb.gmra.mxu0 %vm1311_vm0, %v4392_v45  ;;  %v3070_v46 = vor.u32 %v3804_v36, %v3067_v37  ;;  %v3820_v36 = vld [vmem:[#allocation5 + $0x44c] sm:$0xf]  ;;  %v3131_v37 = vld [vmem:[#allocation5 + $0x458] sm:$0xf0] }
  0xb1   :  { %1604 = vmatpush.bf16.msra.mxu0 %v2782_v54  ;;  %v3198_v54 = vor.u32 %v3836_v39, %v3195_v42  ;;  %v3006_v39 = vor.u32 %v3788_v26, %v3003_v28  ;;  %v2859_v42 = vld [vmem:[#allocation5 + $0x238] sm:$0xf0]  ;;  %v3134_v49 = vor.u32 %v3820_v36, %v3131_v37  ;;  %v3812_v8 = vld [vmem:[#allocation5 + $0x40c] sm:$0xf]  ;;  %v3397_v36 = vld [vmem:[#allocation8 + $0x40] sm:$0xf] }
  0xb2   :  { %1554 = vmatpush.bf16.msra.mxu1 %v3130_v56  ;;  %v2926_v56 = vor.u32 %v3768_v43, %v2923_v44  ;;  %v3784_v43 = vld [vmem:[#allocation5 + $0x32c] sm:$0xf]  ;;  %v2987_v44 = vld [vmem:[#allocation5 + $0x338] sm:$0xf0] }
  0xb3   :  { %1592 = vmatpush.bf16.msrb.mxu2 %v2638_v52  ;;  %v3872_v52 = vld [vmem:[#allocation5 + $0x5ec] sm:$0xf]  ;;  %v3227_v26 = vld [vmem:[#allocation5 + $0x518] sm:$0xf0] }
  0xb4   :  { %1567 = vmatpush.bf16.msra.mxu3 %v3258_v61  ;;  %v3054_v61 = vor.u32 %v3800_v47, %v3051_v50  ;;  %v3342_v62 = vor.u32 %v3872_v52, %v3339_v53  ;;  %v3275_v47 = vld [vmem:[#allocation5 + $0x578] sm:$0xf0]  ;;  %v323_v50 = vperm.slane %v4424_v33, 0  ;;  %v3816_v53 = vld [vmem:[#allocation5 + $0x42c] sm:$0xf] }
  0xb5   :  { %1605 = vmatpush.bf16.msra.mxu0 %v2766_v5  ;;  %v3323_v5 = vld [vmem:[#allocation5 + $0x5d8] sm:$0xf0]  ;;  %v3888_v37 = vld [vmem:[#allocation8 + $0x44] sm:$0xf0] }
  0xb6   :  { %1555 = vmatpush.bf16.msra.mxu1 %v3114_v6  ;;  %v3182_v6 = vor.u32 %v3832_v59, %v3179_v60  ;;  %v3326_v11 = vor.u32 %v3868_v3, %v3323_v5  ;;  %v3748_v59 = vld [vmem:[#allocation5 + $0x20c] sm:$0xf]  ;;  %v2843_v60 = vld [vmem:[#allocation5 + $0x218] sm:$0xf0]  ;;  %v3421_v3 = vld [vmem:[#allocation8 + $0x70] sm:$0xf] }
  0xb7   :  { %1593 = vmatpush.bf16.msrb.mxu2 %v2622_v2  ;;  %v3035_v2 = vld [vmem:[#allocation5 + $0x398] sm:$0xf0] }
  0xb8   :  { %1568 = vmatpush.bf16.msra.mxu3 %v3242_v10  ;;  %v3038_v10 = vor.u32 %v3796_v1, %v3035_v2  ;;  %v3894_v5 = vld [vmem:[#allocation8 + $0x74] sm:$0xf0] }
  0xb9   :  { %1606 = vmatpush.bf16.msra.mxu0 %v2750_v20  ;;  %v4419_v14 = vpop.f32.mrf.mxu0  ;;  %v3824_v20 = vld [vmem:[#allocation5 + $0x46c] sm:$0xf] }
  0xba   :  { %1556 = vmatpush.bf16.msra.mxu1 %v3098_v21  ;;  %v3147_v21 = vld [vmem:[#allocation5 + $0x478] sm:$0xf0]  ;;  %v1325_v15 = vadd.f32 %v4419_v14, %v323_v50  ;;  %v3405_v14 = vld [vmem:[#allocation8 + $0x50] sm:$0xf]  ;;  %v3884_v50 = vld [vmem:[#allocation8 + $0x24] sm:$0xf0] }
  0xbb   :  { %1594 = vmatpush.bf16.msrb.mxu2 %v2606_v17  ;;  %v3307_v17 = vld [vmem:[#allocation5 + $0x5b8] sm:$0xf0]  ;;  %v3150_v32 = vor.u32 %v3824_v20, %v3147_v21  ;;  %v3413_v20 = vld [vmem:[#allocation8 + $0x60] sm:$0xf]  ;;  %v3892_v21 = vld [vmem:[#allocation8 + $0x64] sm:$0xf0] }
  0xbc   :  { %1569 = vmatpush.bf16.msra.mxu3 %v3226_v24  ;;  %v3310_v23 = vor.u32 %v3864_v16, %v3307_v17  ;;  %v3756_v24 = vld [vmem:[#allocation5 + $0x24c] sm:$0xf]  ;;  %v3243_v17 = vld [vmem:[#allocation5 + $0x538] sm:$0xf0]  ;;  %v3414_v28 = vor.u32 %v3892_v21, %v3413_v20  ;;  %v3453_v21 = vld [vmem:[#allocation8 + $0xb0] sm:$0xf] }
  0xbd   :  { %1557 = vmatmul.bf16.vlgmr.msra.gmra.mxu1 %v4396_v30  ;;  %1607 = vmatpush.bf16.msra.mxu0 %v2734_v41  ;;  %v3752_v41 = vld [vmem:[#allocation5 + $0x22c] sm:$0xf] }
  0xbe   :  { %1614 = vmatpush.bf16.msrb.mxu1 %v2958_v25  ;;  %v2875_v25 = vld [vmem:[#allocation5 + $0x258] sm:$0xf0]  ;;  %v2862_v52 = vor.u32 %v3752_v41, %v2859_v42  ;;  %v3848_v16 = vld [vmem:[#allocation5 + $0x52c] sm:$0xf] }
  0xbf   :  { %1595 = vmatpush.bf16.msrb.mxu2 %v2590_v34  ;;  %1570 = vmatmul.bf16.vlgmr.msra.gmra.mxu3 %v4398_v35  ;;  %v2878_v34 = vor.u32 %v3756_v24, %v2875_v25  ;;  %v3844_v25 = vld [vmem:[#allocation5 + $0x50c] sm:$0xf]  ;;  %v3886_v42 = vld [vmem:[#allocation8 + $0x34] sm:$0xf0] }
  0xc0   :  { %1627 = vmatpush.bf16.msrb.mxu3 %v3086_v29  ;;  %v4422_v27 = vpop.f32.mrf.mxu1  ;;  %v3860_v29 = vld [vmem:[#allocation5 + $0x58c] sm:$0xf] }
  0xc1   :  { %1608 = vmatpush.bf16.msra.mxu0 %v2718_v58  ;;  %v1326_v48 = vpop.f32.mrf.mxu0  ;;  %v1338_v24 = vadd.f32 %v4422_v27, %v1325_v15 }
  0xc2   :  { %1615 = vmatpush.bf16.msrb.mxu1 %v2942_v40  ;;  %1596 = vmatmul.bf16.vlgmr.msrb.gmra.mxu2 %v4382_v55  ;;  %v2891_v55 = vld [vmem:[#allocation5 + $0x278] sm:$0xf0]  ;;  %v3294_v40 = vor.u32 %v3860_v29, %v3291_v31 }
  0xc3   :  { %1640 = vmatpush.bf16.msra.mxu2 %v3214_v38  ;;  %v2894_v19 = vor.u32 %v3760_v12, %v2891_v55  ;;  %v3876_v12 = vld [vmem:[#allocation5 + $0x60c] sm:$0xf]  ;;  %v3355_v55 = vld [vmem:[#allocation5 + $0x618] sm:$0xf0] }
  0xc4   :  { %1628 = vmatpush.bf16.msrb.mxu3 %v3070_v46  ;;  %1609 = vmatmul.bf16.vlgmr.msra.gmra.mxu0 %v4388_v4  ;;  %v4426_v4 = vpop.f32.mrf.mxu2  ;;  %v4428_v38 = vpop.f32.mrf.mxu3  ;;  %v3856_v46 = vld [vmem:[#allocation5 + $0x56c] sm:$0xf]  ;;  %v3890_v29 = vld [vmem:[#allocation8 + $0x54] sm:$0xf0] }
  0xc5   :  { %1653 = vmatpush.bf16.msrb.mxu0 %v3342_v62  ;;  %v3278_v58 = vor.u32 %v3856_v46, %v3275_v47  ;;  %v2971_v62 = vld [vmem:[#allocation5 + $0x318] sm:$0xf0]  ;;  %v3406_v27 = vor.u32 %v3890_v29, %v3405_v14  ;;  %v3445_v14 = vld [vmem:[#allocation8 + $0xa0] sm:$0xf]  ;;  %v3900_v29 = vld [vmem:[#allocation8 + $0xa4] sm:$0xf0] }
  0xc6   :  { %1616 = vmatpush.bf16.msrb.mxu1 %v2926_v56  ;;  %v2990_v56 = vor.u32 %v3784_v43, %v2987_v44  ;;  %v3910_v43 = vld [vmem:[#allocation8 + $0xf4] sm:$0xf0] }
  0xc7   :  { %1641 = vmatpush.bf16.msra.mxu2 %v3198_v54  ;;  %v3115_v54 = vld [vmem:[#allocation5 + $0x438] sm:$0xf0] }
  0xc8   :  { %1629 = vmatpush.bf16.msrb.mxu3 %v3054_v61  ;;  %v3780_v61 = vld [vmem:[#allocation5 + $0x30c] sm:$0xf]  ;;  %v1339_v1 = vpop.f32.mrf.mxu1  ;;  %v3118_v2 = vor.u32 %v3816_v53, %v3115_v54  ;;  %v3477_v54 = vld [vmem:[#allocation8 + $0xe0] sm:$0xf] }
  0xc9   :  { %1654 = vmatpush.bf16.msrb.mxu0 %v3326_v11  ;;  %v3262_v11 = vor.u32 %v3852_v63, %v3259_v0  ;;  %v3906_v1 = vld [vmem:[#allocation8 + $0xd4] sm:$0xf0] }
  0xca   :  { %1617 = vmatpush.bf16.msrb.mxu1 %v2910_v7  ;;  %v2846_v7 = vor.u32 %v3748_v59, %v2843_v60  ;;  %v3882_v59 = vld [vmem:[#allocation8 + $0x14] sm:$0xf0] }
  0xcb   :  { %1642 = vmatpush.bf16.msra.mxu2 %v3182_v6 }
  0xcc   :  { %1630 = vmatpush.bf16.msrb.mxu3 %v3038_v10  ;;  %v1352_v6 = vpop.f32.mrf.mxu2  ;;  %v2974_v10 = vor.u32 %v3780_v61, %v2971_v62  ;;  %v1365_v13 = vpop.f32.mrf.mxu3  ;;  %v3469_v62 = vld [vmem:[#allocation8 + $0xd0] sm:$0xf] }
  0xcd   :  { %1655 = vmatpush.bf16.msrb.mxu0 %v3310_v23  ;;  %v3246_v23 = vor.u32 %v3848_v16, %v3243_v17  ;;  %v3365_v6 = vld [vmem:[#allocation8] sm:$0xf]  ;;  %v3891_v17 = vld [vmem:[#allocation8 + $0x64] sm:$0xf] }
  0xce   :  { %1618 = vmatpush.bf16.msrb.mxu1 %v2894_v19  ;;  %v3102_v19 = vor.u32 %v3812_v8, %v3099_v9  ;;  %v3893_v8 = vld [vmem:[#allocation8 + $0x74] sm:$0xf]  ;;  %v3423_v9 = vld [vmem:[#allocation8 + $0x78] sm:$0xf0] }
  0xcf   :  { %1643 = vmatpush.bf16.msra.mxu2 %v3166_v18  ;;  %v3422_v18 = vor.u32 %v3894_v5, %v3421_v3  ;;  %v3470_v3 = vor.u32 %v3906_v1, %v3469_v62 }
  0xd0   :  { %1631 = vmatpush.bf16.msrb.mxu3 %v3022_v22  ;;  %v3358_v22 = vor.u32 %v3876_v12, %v3355_v55  ;;  %v3904_v12 = vld [vmem:[#allocation8 + $0xc4] sm:$0xf0]  ;;  %v3426_v55 = vor.u32 %v3893_v8, %v3423_v9  ;;  %v3375_v8 = vld [vmem:[#allocation8 + $0x18] sm:$0xf0] }
  0xd1   :  { %1656 = vmatpush.bf16.msrb.mxu0 %v3294_v40  ;;  %v3485_v40 = vld [vmem:[#allocation8 + $0xf0] sm:$0xf] }
  0xd2   :  { %1619 = vmatpush.bf16.msrb.mxu1 %v2878_v34  ;;  %v1351_v34 = vadd.f32 %v4426_v4, %v1338_v24  ;;  %v3889_v24 = vld [vmem:[#allocation8 + $0x54] sm:$0xf] }
  0xd3   :  { %1644 = vmatpush.bf16.msra.mxu2 %v3150_v32  ;;  %v3230_v32 = vor.u32 %v3844_v25, %v3227_v26  ;;  %v3407_v25 = vld [vmem:[#allocation8 + $0x58] sm:$0xf0] }
  0xd4   :  { %1632 = vmatpush.bf16.msrb.mxu3 %v3006_v39  ;;  %v1402_v31 = vpop.f32.mrf.mxu2  ;;  %v3398_v39 = vor.u32 %v3888_v37, %v3397_v36 }
  0xd5   :  { %1657 = vmatpush.bf16.msrb.mxu0 %v3278_v58  ;;  %v3373_v58 = vld [vmem:[#allocation8 + $0x10] sm:$0xf] }
  0xd6   :  { %1620 = vmatpush.bf16.msrb.mxu1 %v2862_v52  ;;  %v3374_v5 = vor.u32 %v3882_v59, %v3373_v58  ;;  %v3883_v58 = vld [vmem:[#allocation8 + $0x24] sm:$0xf]  ;;  %v3383_v59 = vld [vmem:[#allocation8 + $0x28] sm:$0xf0] }
  0xd7   :  { %1645 = vmatpush.bf16.msra.mxu2 %v3134_v49  ;;  %v3381_v49 = vld [vmem:[#allocation8 + $0x20] sm:$0xf]  ;;  %v3386_v1 = vor.u32 %v3883_v58, %v3383_v59  ;;  %v3920_v59 = vld [vmem:[#allocation8 + $0x144] sm:$0xf0] }
  0xd8   :  { %1633 = vmatpush.bf16.msrb.mxu3 %v2990_v56  ;;  %v3382_v53 = vor.u32 %v3884_v50, %v3381_v49  ;;  %v3908_v56 = vld [vmem:[#allocation8 + $0xe4] sm:$0xf0]  ;;  %v3429_v49 = vld [vmem:[#allocation8 + $0x80] sm:$0xf] }
  0xd9   :  { %1658 = vmatpush.bf16.msrb.mxu0 %v3262_v11  ;;  %v1376_v41 = vpop.f32.mrf.mxu0  ;;  %v3461_v11 = vld [vmem:[#allocation8 + $0xc0] sm:$0xf]  ;;  %v3896_v50 = vld [vmem:[#allocation8 + $0x84] sm:$0xf0] }
  0xda   :  { %1621 = vmatpush.bf16.msrb.mxu1 %v2846_v7  ;;  %v1389_v46 = vpop.f32.mrf.mxu1  ;;  %v3880_v7 = vld [vmem:[#allocation8 + $0x4] sm:$0xf0]  ;;  %v3462_v15 = vor.u32 %v3904_v12, %v3461_v11  ;;  %v3525_v58 = vld [vmem:[#allocation8 + $0x140] sm:$0xf] }
  0xdb   :  { %1646 = vmatpush.bf16.msra.mxu2 %v3118_v2 }
  0xdc   :  { %1634 = vmatpush.bf16.msrb.mxu3 %v2974_v10  ;;  %v1404_v4 = vpop.f32.mrf.mxu2  ;;  %v3366_v10 = vor.u32 %v3880_v7, %v3365_v6  ;;  %v3881_v7 = vld [vmem:[#allocation8 + $0x14] sm:$0xf] }
  0xdd   :  { %1622 = vmatmul.bf16.vlgmr.msrb.gmra.mxu1 %v4380_v51  ;;  %1659 = vmatpush.bf16.msrb.mxu0 %v3246_v23  ;;  %v1364_v51 = vadd.f32 %v4428_v38, %v1351_v34  ;;  %v3887_v34 = vld [vmem:[#allocation8 + $0x44] sm:$0xf] }
  0xdf   :  { %1647 = vmatpush.bf16.msra.mxu2 %v3102_v19  ;;  %1635 = vmatmul.bf16.vlgmr.msrb.gmra.mxu3 %v4384_v57  ;;  %v3389_v57 = vld [vmem:[#allocation8 + $0x30] sm:$0xf]  ;;  %v1377_v44 = vadd.f32 %v1376_v41, %v1364_v51 }
  0xe0   :  { %2157 = vmatpush.bf16.msra.mxu3 %v3422_v18  ;;  %v3390_v48 = vor.u32 %v3886_v42, %v3389_v57  ;;  %v3415_v18 = vld [vmem:[#allocation8 + $0x68] sm:$0xf0] }
  0xe1   :  { %1660 = vmatpush.bf16.msrb.mxu0 %v3230_v32  ;;  %v1390_v47 = vadd.f32 %v1389_v46, %v1377_v44  ;;  %v1378_v60 = vpop.f32.mrf.mxu0  ;;  %v3418_v23 = vor.u32 %v3891_v17, %v3415_v18  ;;  %v3446_v32 = vor.u32 %v3900_v29, %v3445_v14  ;;  %v3391_v44 = vld [vmem:[#allocation8 + $0x38] sm:$0xf0]  ;;  %v3367_v18 = vld [vmem:[#allocation8 + $0x8] sm:$0xf0]  ;;  %v3901_v14 = vld [vmem:[#allocation8 + $0xb4] sm:$0xf] }
  0xe2   :  { %1648 = vmatmul.bf16.vlgmr.msra.gmra.mxu2 %v4396_v30  ;;  %v3486_v30 = vor.u32 %v3910_v43, %v3485_v40  ;;  %v1415_v61 = vpop.f32.mrf.mxu3  ;;  %v1391_v0 = vpop.f32.mrf.mxu1  ;;  %v3898_v40 = vld [vmem:[#allocation8 + $0x94] sm:$0xf0]  ;;  %v3885_v43 = vld [vmem:[#allocation8 + $0x34] sm:$0xf]  ;;  %v3455_v29 = vld [vmem:[#allocation8 + $0xb8] sm:$0xf0] }
  0xe3   :  { %1673 = vmatpush.bf16.msrb.mxu2 %v3358_v22  ;;  %v1403_v38 = vadd.f32 %v1402_v31, %v1390_v47  ;;  %v3902_v22 = vld [vmem:[#allocation8 + $0xb4] sm:$0xf0]  ;;  %v3410_v31 = vor.u32 %v3889_v24, %v3407_v25 }
  0xe4   :  { %2158 = vmatpush.bf16.msra.mxu3 %v3414_v28  ;;  %1661 = vmatmul.bf16.vlgmr.msrb.gmra.mxu0 %v4398_v35  ;;  %v3478_v35 = vor.u32 %v3908_v56, %v3477_v54  ;;  %v3454_v26 = vor.u32 %v3902_v22, %v3453_v21  ;;  %v3487_v54 = vld [vmem:[#allocation8 + $0xf8] sm:$0xf0] }
  0xe5   :  { %2170 = vmatpush.bf16.msra.mxu1 %v3486_v30  ;;  %1679 = vst [vmem:[#allocation11] sm:$0xff] %v1403_v38  ;;  %v1683_v52 = vsub.f32 0.0, %v1403_v38  ;;  %v1428_v2 = vpop.f32.mrf.mxu2  ;;  %v3394_v38 = vor.u32 %v3885_v43, %v3391_v44  ;;  %v3541_v44 = vld [vmem:[#allocation8 + $0x160] sm:$0xf] }
  0xe7   :  { %v1687_v63 = vmul.f32 1.442695, %v1683_v52  ;;  %v3430_v52 = vor.u32 %v3896_v50, %v3429_v49  ;;  %v3895_v49 = vld [vmem:[#allocation8 + $0x84] sm:$0xf]  ;;  %v3431_v50 = vld [vmem:[#allocation8 + $0x88] sm:$0xf0] }
  0xe8   :  { %2159 = vmatpush.bf16.msra.mxu3 %v3406_v27  ;;  %v3399_v27 = vld [vmem:[#allocation8 + $0x48] sm:$0xf0] }
  0xe9   :  { %2171 = vmatpush.bf16.msra.mxu1 %v3478_v35  ;;  %3977 = vpow2.f32 %v1687_v63  ;;  %v3402_v41 = vor.u32 %v3887_v34, %v3399_v27  ;;  %v3899_v34 = vld [vmem:[#allocation8 + $0xa4] sm:$0xf]  ;;  %v3447_v27 = vld [vmem:[#allocation8 + $0xa8] sm:$0xf0] }
  0xea   :  { %v1417_v13 = vpop.f32.mrf.mxu3 }
  0xeb   :  { %v3471_v13 = vld [vmem:[#allocation8 + $0xd8] sm:$0xf0] }
  0xec   :  { %2160 = vmatpush.bf16.msra.mxu3 %v3398_v39  ;;  %v3437_v39 = vld [vmem:[#allocation8 + $0x90] sm:$0xf] }
  0xed   :  { %2172 = vmatpush.bf16.msra.mxu1 %v3470_v3  ;;  %v1430_v20 = vpop.f32.mrf.mxu2  ;;  %v3438_v57 = vor.u32 %v3898_v40, %v3437_v39  ;;  %v3479_v3 = vld [vmem:[#allocation8 + $0xe8] sm:$0xf0]  ;;  %v3450_v40 = vor.u32 %v3899_v34, %v3447_v27  ;;  %v3923_v34 = vld [vmem:[#allocation8 + $0x164] sm:$0xf] }
  0xee   :  { %v3463_v20 = vld [vmem:[#allocation8 + $0xc8] sm:$0xf0] }
  0xef   :  { %v3978_v16 = vpop.eup %3977  ;;  %v3543_v27 = vld [vmem:[#allocation8 + $0x168] sm:$0xf0] }
  0xf0   :  { %2161 = vmatpush.bf16.msra.mxu3 %v3390_v48  ;;  %v1695_v19 = vadd.f32 1.0, %v3978_v16  ;;  %v3879_v16 = vld [vmem:[#allocation8 + $0x4] sm:$0xf] }
  0xf1   :  { %2173 = vmatpush.bf16.msra.mxu1 %v3462_v15  ;;  %v3378_v15 = vor.u32 %v3881_v7, %v3375_v8  ;;  %v3370_v22 = vor.u32 %v3879_v16, %v3367_v18 }
  0xf2   :  { %3362 = vmatmul.msk.bf16.vlgmr.msrb.gmra.mxu2 %vm1311_vm0, %v4392_v45  ;;  %v324_v45 = vperm.slane %v4424_v33, 1  ;;  %3979 = vrcp.f32 %v1695_v19  ;;  %v1710_v4 = vand.u32 2147483648, %v1695_v19  ;;  %v1708_v48 = vand.u32 2147483647, %v1695_v19 }
  0xf3   :  { %vm1704_vm2 = vweird.f32 %v1695_v19 }
  0xf4   :  { %2162 = vmatpush.bf16.msra.mxu3 %v3382_v53  ;;  %v1416_v28 = vadd.f32 %v1415_v61, %v324_v45  ;;  %v3909_v53 = vld [vmem:[#allocation8 + $0xf4] sm:$0xf]  ;;  %v1711_v35 = vor.u32 1.1754944e-38, %v1710_v4  ;;  %vm1709_vm4 = vcmp.eq.f32.partialorder %v1708_v48, 8.507059e+37 }
  0xf5   :  { %2174 = vmatpush.bf16.msra.mxu1 %v3454_v26  ;;  %v3490_v60 = vor.u32 %v3909_v53, %v3487_v54  ;;  %v3922_v53 = vld [vmem:[#allocation8 + $0x154] sm:$0xf0] }
  0xf6   :  { %v1429_v37 = vadd.f32 %v1428_v2, %v1416_v28  ;;  %v3907_v2 = vld [vmem:[#allocation8 + $0xe4] sm:$0xf] }
  0xf7   :  { %v3482_v9 = vor.u32 %v3907_v2, %v3479_v3  ;;  %v3918_v2 = vld [vmem:[#allocation8 + $0x134] sm:$0xf0] }
  0xf8   :  { %2163 = vmatpush.bf16.msra.mxu3 %v3374_v5  ;;  %v3980_v36 = vpop.eup %3979 }
  0xf9   :  { %v1700_v51 = vmul.f32 %v3980_v36, %v1695_v19  ;;  %2175 = vmatpush.bf16.msra.mxu1 %v3446_v32  ;;  %v1441_v46 = vpop.f32.mrf.mxu0  ;;  %vm1705_vm1 = vweird.f32 %v3980_v36  ;;  %v3903_v19 = vld [vmem:[#allocation8 + $0xc4] sm:$0xf]  ;;  %v3458_v32 = vor.u32 %v3901_v14, %v3455_v29  ;;  %v3925_v14 = vld [vmem:[#allocation8 + $0x174] sm:$0xf]  ;;  %v3551_v29 = vld [vmem:[#allocation8 + $0x178] sm:$0xf0] }
  0xfa   :  { %v1442_v30 = vadd.f32 %v1441_v46, %v1429_v37  ;;  %v1454_v61 = vpop.f32.mrf.mxu1  ;;  %vm1706_vm3 = vmor %vm1704_vm2, %vm1705_vm1  ;;  %v3926_v37 = vld [vmem:[#allocation8 + $0x174] sm:$0xf0]  ;;  %v3924_v46 = vld [vmem:[#allocation8 + $0x164] sm:$0xf0] }
  0xfb   :  { %v1701_v42 = vsub.f32 1.0, %v1700_v51  ;;  %v3542_v4 = vor.u32 %v3924_v46, %v3541_v44  ;;  %v3919_v44 = vld [vmem:[#allocation8 + $0x144] sm:$0xf]  ;;  %v3527_v46 = vld [vmem:[#allocation8 + $0x148] sm:$0xf0] }
  0xfc   :  { %2164 = vmatpush.bf16.msra.mxu3 %v3366_v10  ;;  %v1455_v62 = vadd.f32 %v1454_v61, %v1442_v30 }
  0xfd   :  { %v1702_v47 = vmul.f32 %v3980_v36, %v1701_v42  ;;  %2176 = vmatpush.bf16.msra.mxu1 %v3438_v57  ;;  %v3897_v57 = vld [vmem:[#allocation8 + $0x94] sm:$0xf]  ;;  %v3439_v42 = vld [vmem:[#allocation8 + $0x98] sm:$0xf0] }
  0xfe   :  { %v3442_v43 = vor.u32 %v3897_v57, %v3439_v42 }
  0xff   :  { %v1703_v56 = vadd.f32 %v3980_v36, %v1702_v47 }
 0x100   :  { %2209 = vmatpush.bf16.msrb.mxu3 %v3426_v55  ;;  %v3905_v55 = vld [vmem:[#allocation8 + $0xd4] sm:$0xf] }
 0x101   :  { %v1707_v63 = vsel %vm1706_vm3, %v3980_v36, %v1703_v56  ;;  %2177 = vmatpush.bf16.msra.mxu1 %v3430_v52  ;;  %v1443_v10 = vpop.f32.mrf.mxu0  ;;  %v3474_v17 = vor.u32 %v3905_v55, %v3471_v13  ;;  %v3549_v36 = vld [vmem:[#allocation8 + $0x170] sm:$0xf]  ;;  %v325_v13 = vperm.slane %v4424_v33, 2 }
 0x102   :  { %v1712_v0 = vsel %vm1709_vm4, %v1711_v35, %v1707_v63  ;;  %v1467_v6 = vpop.f32.mrf.mxu3  ;;  %v1456_v45 = vpop.f32.mrf.mxu1  ;;  %v3550_v39 = vor.u32 %v3926_v37, %v3549_v36  ;;  %v3533_v52 = vld [vmem:[#allocation8 + $0x150] sm:$0xf]  ;;  %v3509_v10 = vld [vmem:[#allocation8 + $0x120] sm:$0xf]  ;;  %v3546_v37 = vor.u32 %v3923_v34, %v3543_v27  ;;  %v3930_v27 = vld [vmem:[#allocation8 + $0x194] sm:$0xf0] }
 0x103   :  { %1759 = vst [vmem:[#allocation12] sm:$0xff] %v1712_v0  ;;  %v1763_v5 = vpack.c.bf16 %v1712_v0, %v1712_v0  ;;  %v1468_v11 = vadd.f32 %v1467_v6, %v1455_v62  ;;  %v3534_v56 = vor.u32 %v3922_v53, %v3533_v52  ;;  %v3917_v52 = vld [vmem:[#allocation8 + $0x134] sm:$0xf]  ;;  %v3519_v53 = vld [vmem:[#allocation8 + $0x138] sm:$0xf0] }
 0x104   :  { %2210 = vmatpush.bf16.msrb.mxu3 %v3418_v23  ;;  %v3466_v23 = vor.u32 %v3903_v19, %v3463_v20  ;;  %2183 = vmatpush.bf16.msra.mxu2 %v3550_v39  ;;  %v3501_v19 = vld [vmem:[#allocation8 + $0x110] sm:$0xf]  ;;  %v3914_v20 = vld [vmem:[#allocation8 + $0x114] sm:$0xf0] }
 0x105   :  { %2222 = vmatpush.bf16.msrb.mxu1 %v3490_v60  ;;  %2165 = vmatmul.bf16.vlgmr.msra.gmra.mxu3 %v1763_v5  ;;  %v1480_v12 = vpop.f32.mrf.mxu2  ;;  %v3526_v60 = vor.u32 %v3920_v59, %v3525_v58  ;;  %v3942_v58 = vld [vmem:[#allocation8 + $0x1f4] sm:$0xf0]  ;;  %v3565_v34 = vld [vmem:[#allocation8 + $0x190] sm:$0xf] }
 0x106   :  { %v1481_v21 = vadd.f32 %v1480_v12, %v1468_v11  ;;  %v3916_v11 = vld [vmem:[#allocation8 + $0x124] sm:$0xf0] }
 0x107   :  { %v3510_v12 = vor.u32 %v3916_v11, %v3509_v10 }
 0x108   :  { %2211 = vmatpush.bf16.msrb.mxu3 %v3410_v31  ;;  %2184 = vmatpush.bf16.msra.mxu2 %v3542_v4 }
 0x109   :  { %2223 = vmatpush.bf16.msrb.mxu1 %v3482_v9  ;;  %v1493_v25 = vpop.f32.mrf.mxu0 }
 0x10a   :  { %v1469_v24 = vpop.f32.mrf.mxu3  ;;  %v1494_v26 = vadd.f32 %v1493_v25, %v1481_v21  ;;  %v3502_v21 = vor.u32 %v3914_v20, %v3501_v19  ;;  %v3493_v25 = vld [vmem:[#allocation8 + $0x100] sm:$0xf]  ;;  %v3936_v19 = vld [vmem:[#allocation8 + $0x1c4] sm:$0xf0] }
 0x10c   :  { %2212 = vmatpush.bf16.msrb.mxu3 %v3402_v41  ;;  %1680 = vst [vmem:[#allocation11 + $0x8] sm:$0xff] %v1494_v26  ;;  %v1684_v31 = vsub.f32 0.0, %v1494_v26  ;;  %2185 = vmatpush.bf16.msra.mxu2 %v3534_v56  ;;  %v3912_v26 = vld [vmem:[#allocation8 + $0x104] sm:$0xf0]  ;;  %v3613_v56 = vld [vmem:[#allocation8 + $0x1f0] sm:$0xf] }
 0x10d   :  { %2224 = vmatpush.bf16.msrb.mxu1 %v3474_v17  ;;  %v1482_v28 = vpop.f32.mrf.mxu2 }
 0x10e   :  { %v1689_v51 = vmul.f32 1.442695, %v1684_v31  ;;  %v3494_v28 = vor.u32 %v3912_v26, %v3493_v25  ;;  %v3554_v31 = vor.u32 %v3925_v14, %v3551_v29  ;;  %v3573_v25 = vld [vmem:[#allocation8 + $0x1a0] sm:$0xf]  ;;  %v3932_v26 = vld [vmem:[#allocation8 + $0x1a4] sm:$0xf0] }
 0x10f   :  { %v3574_v14 = vor.u32 %v3932_v26, %v3573_v25  ;;  %v326_v29 = vperm.slane %v4424_v33, 3 }
 0x110   :  { %2213 = vmatpush.bf16.msrb.mxu3 %v3394_v38  ;;  %3981 = vpow2.f32 %v1689_v51  ;;  %v3434_v38 = vor.u32 %v3895_v49, %v3431_v50  ;;  %2186 = vmatpush.bf16.msra.mxu2 %v3526_v60  ;;  %v3614_v60 = vor.u32 %v3942_v58, %v3613_v56  ;;  %v3939_v58 = vld [vmem:[#allocation8 + $0x1e4] sm:$0xf] }
 0x111   :  { %2225 = vmatpush.bf16.msrb.mxu1 %v3466_v23  ;;  %v1495_v41 = vpop.f32.mrf.mxu0 }
 0x112   :  { %v3535_v41 = vld [vmem:[#allocation8 + $0x158] sm:$0xf0]  ;;  %2196 = vmatpush.bf16.msra.mxu0 %v3614_v60 }
 0x114   :  { %2214 = vmatpush.bf16.msrb.mxu3 %v3386_v1  ;;  %v3517_v1 = vld [vmem:[#allocation8 + $0x130] sm:$0xf] }
 0x115   :  { %2226 = vmatpush.bf16.msrb.mxu1 %v3458_v32  ;;  %v3518_v3 = vor.u32 %v3918_v2, %v3517_v1  ;;  %v3605_v1 = vld [vmem:[#allocation8 + $0x1e0] sm:$0xf]  ;;  %v3940_v2 = vld [vmem:[#allocation8 + $0x1e4] sm:$0xf0] }
 0x116   :  { %v3982_v30 = vpop.eup %3981 }
 0x117   :  { %v1696_v48 = vadd.f32 1.0, %v3982_v30  ;;  %2187 = vmatpush.bf16.msra.mxu2 %v3518_v3  ;;  %v3530_v30 = vor.u32 %v3919_v44, %v3527_v46  ;;  %v3913_v3 = vld [vmem:[#allocation8 + $0x114] sm:$0xf]  ;;  %v3557_v44 = vld [vmem:[#allocation8 + $0x180] sm:$0xf] }
 0x118   :  { %2215 = vmatpush.bf16.msrb.mxu3 %v3378_v15  ;;  %v3928_v46 = vld [vmem:[#allocation8 + $0x184] sm:$0xf0] }
 0x119   :  { %2227 = vmatpush.bf16.msrb.mxu1 %v3450_v40  ;;  %3983 = vrcp.f32 %v1696_v48  ;;  %v1725_v7 = vand.u32 2147483648, %v1696_v48  ;;  %v1723_v9 = vand.u32 2147483647, %v1696_v48  ;;  %vm1719_vm6 = vweird.f32 %v1696_v48  ;;  %v3921_v40 = vld [vmem:[#allocation8 + $0x154] sm:$0xf] }
 0x11a   :  { %v1506_v47 = vpop.f32.mrf.mxu1  ;;  %v3538_v57 = vor.u32 %v3921_v40, %v3535_v41 }
 0x11b   :  { %v1726_v15 = vor.u32 1.1754944e-38, %v1725_v7  ;;  %vm1724_vm8 = vcmp.eq.f32.partialorder %v1723_v9, 8.507059e+37  ;;  %2188 = vmatpush.bf16.msra.mxu2 %v3510_v12  ;;  %v1507_v24 = vadd.f32 %v1506_v47, %v325_v13  ;;  %v3597_v7 = vld [vmem:[#allocation8 + $0x1d0] sm:$0xf]  ;;  %v3911_v13 = vld [vmem:[#allocation8 + $0x104] sm:$0xf] }
 0x11c   :  { %2216 = vmatpush.bf16.msrb.mxu3 %v3370_v22 }
 0x11d   :  { %2228 = vmatpush.bf16.msrb.mxu1 %v3442_v43  ;;  %v1532_v54 = vpop.f32.mrf.mxu0 }
 0x11f   :  { %2217 = vmatmul.bf16.vlgmr.msrb.gmra.mxu3 %v1763_v5  ;;  %v3984_v35 = vpop.eup %3983  ;;  %2189 = vmatpush.bf16.msra.mxu2 %v3502_v21  ;;  %v3934_v21 = vld [vmem:[#allocation8 + $0x1b4] sm:$0xf0] }
 0x120   :  { %v1715_v63 = vmul.f32 %v3984_v35, %v1696_v48  ;;  %vm1720_vm5 = vweird.f32 %v3984_v35 }
 0x121   :  { %2229 = vmatpush.bf16.msrb.mxu1 %v3434_v38  ;;  %vm1721_vm7 = vmor %vm1719_vm6, %vm1720_vm5 }
 0x122   :  { %v1508_v61 = vpop.f32.mrf.mxu1  ;;  %v1519_v0 = vpop.f32.mrf.mxu3  ;;  %v1716_v5 = vsub.f32 1.0, %v1715_v63 }
 0x123   :  { %v1520_v32 = vadd.f32 %v1519_v0, %v1507_v24  ;;  %2190 = vmatpush.bf16.msra.mxu2 %v3494_v28 }
 0x124   :  { %v1717_v8 = vmul.f32 %v3984_v35, %v1716_v5  ;;  %v3606_v5 = vor.u32 %v3940_v2, %v3605_v1  ;;  %v3935_v2 = vld [vmem:[#allocation8 + $0x1c4] sm:$0xf] }
 0x125   :  { %v1545_v62 = vpop.f32.mrf.mxu2  ;;  %v1534_v6 = vpop.f32.mrf.mxu0  ;;  %v1533_v51 = vadd.f32 %v1532_v54, %v1520_v32  ;;  %v3522_v54 = vor.u32 %v3917_v52, %v3519_v53 }
 0x126   :  { %v1718_v55 = vadd.f32 %v3984_v35, %v1717_v8  ;;  %v3503_v6 = vld [vmem:[#allocation8 + $0x118] sm:$0xf0]  ;;  %v3938_v8 = vld [vmem:[#allocation8 + $0x1d4] sm:$0xf0]  ;;  %2197 = vmatpush.bf16.msra.mxu0 %v3606_v5 }
 0x127   :  { %2235 = vmatpush.bf16.msrb.mxu2 %v3554_v31  ;;  %v1546_v42 = vadd.f32 %v1545_v62, %v1533_v51  ;;  %v3511_v62 = vld [vmem:[#allocation8 + $0x128] sm:$0xf0]  ;;  %v3506_v11 = vor.u32 %v3913_v3, %v3503_v6  ;;  %v3598_v12 = vor.u32 %v3938_v8, %v3597_v7 }
 0x128   :  { %v1722_v17 = vsel %vm1721_vm7, %v3984_v35, %v1718_v55  ;;  %v3915_v35 = vld [vmem:[#allocation8 + $0x124] sm:$0xf]  ;;  %v3591_v3 = vld [vmem:[#allocation8 + $0x1c8] sm:$0xf0] }
 0x129   :  { %v1727_v45 = vsel %vm1724_vm8, %v1726_v15, %v1722_v17  ;;  %v3514_v0 = vor.u32 %v3915_v35, %v3511_v62  ;;  %v3495_v15 = vld [vmem:[#allocation8 + $0x108] sm:$0xf0]  ;;  %v3594_v5 = vor.u32 %v3935_v2, %v3591_v3  ;;  %v3943_v2 = vld [vmem:[#allocation10] sm:$0xff] }
 0x12a   :  { %v1521_v18 = vpop.f32.mrf.mxu3  ;;  %1760 = vst [vmem:[#allocation12 + $0x8] sm:$0xff] %v1727_v45  ;;  %v1764_v22 = vpack.c.bf16 %v1727_v45, %v1727_v45  ;;  %2198 = vmatpush.bf16.msra.mxu0 %v3598_v12  ;;  %v3498_v17 = vor.u32 %v3911_v13, %v3495_v15  ;;  %v3581_v45 = vld [vmem:[#allocation8 + $0x1b0] sm:$0xf]  ;;  %v3575_v13 = vld [vmem:[#allocation8 + $0x1a8] sm:$0xf0]  ;;  %v3955_v3 = vld [vmem:[#allocation10 + $0x60] sm:$0xff] }
 0x12b   :  { %2236 = vmatpush.bf16.msrb.mxu2 %v3546_v37  ;;  %v3589_v18 = vld [vmem:[#allocation8 + $0x1c0] sm:$0xf] }
 0x12c   :  { %2178 = vmatmul.bf16.vlgmr.msra.gmra.mxu1 %v1764_v22  ;;  %v3590_v20 = vor.u32 %v3936_v19, %v3589_v18  ;;  %v3567_v18 = vld [vmem:[#allocation8 + $0x198] sm:$0xf0] }
 0x12d   :  { %v1547_v16 = vpop.f32.mrf.mxu2  ;;  %v1584_v23 = vpop.f32.mrf.mxu0 }
 0x12e   :  { %2199 = vmatpush.bf16.msra.mxu0 %v3590_v20 }
 0x12f   :  { %2237 = vmatpush.bf16.msrb.mxu2 %v3538_v57 }
 0x133   :  { %2238 = vmatpush.bf16.msrb.mxu2 %v3530_v30  ;;  %v3558_v30 = vor.u32 %v3928_v46, %v3557_v44 }
 0x135   :  { %v1586_v36 = vpop.f32.mrf.mxu0 }
 0x137   :  { %2239 = vmatpush.bf16.msrb.mxu2 %v3522_v54 }
 0x13a   :  { %v1558_v39 = vpop.f32.mrf.mxu1 }
 0x13b   :  { %v1559_v43 = vadd.f32 %v1558_v39, %v1546_v42  ;;  %2240 = vmatpush.bf16.msrb.mxu2 %v3514_v0  ;;  %v3566_v39 = vor.u32 %v3930_v27, %v3565_v34  ;;  %v3599_v0 = vld [vmem:[#allocation8 + $0x1d8] sm:$0xf0] }
 0x13c   :  { %2230 = vmatmul.bf16.vlgmr.msrb.gmra.mxu1 %v1764_v22  ;;  %v3582_v22 = vor.u32 %v3934_v21, %v3581_v45  ;;  %v3927_v21 = vld [vmem:[#allocation8 + $0x184] sm:$0xf] }
 0x13e   :  { %2200 = vmatpush.bf16.msra.mxu0 %v3582_v22  ;;  %v3559_v22 = vld [vmem:[#allocation8 + $0x188] sm:$0xf0] }
 0x13f   :  { %2241 = vmatpush.bf16.msrb.mxu2 %v3506_v11 }
 0x141   :  { %v4446_v50 = vpop.f32.mrf.mxu0 }
 0x142   :  { %v1571_v4 = vpop.f32.mrf.mxu3  ;;  %v1560_v48 = vpop.f32.mrf.mxu1  ;;  %2201 = vmatpush.bf16.msra.mxu0 %v3574_v14 }
 0x143   :  { %v1572_v47 = vadd.f32 %v1571_v4, %v1559_v43  ;;  %2242 = vmatpush.bf16.msrb.mxu2 %v3498_v17  ;;  %v3615_v48 = vld [vmem:[#allocation8 + $0x1f8] sm:$0xf0]  ;;  %v3929_v17 = vld [vmem:[#allocation8 + $0x194] sm:$0xf] }
 0x144   :  { %v3570_v20 = vor.u32 %v3929_v17, %v3567_v18 }
 0x145   :  { %v4444_v49 = vpop.f32.mrf.mxu2  ;;  %v1585_v38 = vadd.f32 %v1584_v23, %v1572_v47  ;;  %v3941_v47 = vld [vmem:[#allocation8 + $0x1f4] sm:$0xf] }
 0x146   :  { %v1598_v40 = vadd.f32 %v4444_v49, %v326_v29  ;;  %2202 = vmatpush.bf16.msra.mxu0 %v3566_v39  ;;  %v3618_v53 = vor.u32 %v3941_v47, %v3615_v48 }
 0x147   :  { %1681 = vst [vmem:[#allocation11 + $0x10] sm:$0xff] %v1585_v38  ;;  %v1685_v59 = vsub.f32 0.0, %v1585_v38 }
 0x148   :  { %v1611_v38 = vadd.f32 %v4446_v50, %v1598_v40 }
 0x149   :  { %v1691_v61 = vmul.f32 1.442695, %v1685_v59  ;;  %v1612_v10 = vpop.f32.mrf.mxu0  ;;  %v3607_v59 = vld [vmem:[#allocation8 + $0x1e8] sm:$0xf0] }
 0x14a   :  { %v1573_v63 = vpop.f32.mrf.mxu3  ;;  %2203 = vmatpush.bf16.msra.mxu0 %v3558_v30  ;;  %v3583_v10 = vld [vmem:[#allocation8 + $0x1b8] sm:$0xf0] }
 0x14b   :  { %3985 = vpow2.f32 %v1691_v61  ;;  %v3610_v61 = vor.u32 %v3939_v58, %v3607_v59  ;;  %v3937_v63 = vld [vmem:[#allocation8 + $0x1d4] sm:$0xf]  ;;  %v3948_v58 = vld [vmem:[#allocation10 + $0x28] sm:$0xff]  ;;  %v3947_v59 = vld [vmem:[#allocation10 + $0x20] sm:$0xff] }
 0x14c   :  { %v3602_v1 = vor.u32 %v3937_v63, %v3599_v0  ;;  %v3957_v63 = vld [vmem:[#allocation10 + $0x70] sm:$0xff]  ;;  %v3944_v0 = vld [vmem:[#allocation10 + $0x8] sm:$0xff] }
 0x14d   :  { %v1599_v9 = vpop.f32.mrf.mxu2 }
 0x14e   :  { %2248 = vmatpush.bf16.msrb.mxu0 %v3618_v53  ;;  %v3933_v9 = vld [vmem:[#allocation8 + $0x1b4] sm:$0xf] }
 0x14f   :  { %v3586_v12 = vor.u32 %v3933_v9, %v3583_v10  ;;  %v3953_v10 = vld [vmem:[#allocation10 + $0x50] sm:$0xff] }
 0x151   :  { %v3986_v55 = vpop.eup %3985 }
 0x152   :  { %v1697_v16 = vadd.f32 1.0, %v3986_v55  ;;  %2249 = vmatpush.bf16.msrb.mxu0 %v3610_v61  ;;  %v3931_v55 = vld [vmem:[#allocation8 + $0x1a4] sm:$0xf]  ;;  %v3946_v61 = vld [vmem:[#allocation10 + $0x18] sm:$0xff] }
 0x154   :  { %3987 = vrcp.f32 %v1697_v16  ;;  %v1740_v32 = vand.u32 2147483648, %v1697_v16  ;;  %v1738_v51 = vand.u32 2147483647, %v1697_v16  ;;  %vm1734_vm10 = vweird.f32 %v1697_v16 }
 0x156   :  { %v1741_v33 = vor.u32 1.1754944e-38, %v1740_v32  ;;  %vm1739_vm12 = vcmp.eq.f32.partialorder %v1738_v51, 8.507059e+37  ;;  %2250 = vmatpush.bf16.msrb.mxu0 %v3602_v1  ;;  %v3956_v1 = vld [vmem:[#allocation10 + $0x68] sm:$0xff] }
 0x15a   :  { %v1623_v23 = vpop.f32.mrf.mxu1  ;;  %v3988_v24 = vpop.eup %3987  ;;  %2251 = vmatpush.bf16.msrb.mxu0 %v3594_v5 }
 0x15b   :  { %v1730_v28 = vmul.f32 %v3988_v24, %v1697_v16  ;;  %vm1735_vm9 = vweird.f32 %v3988_v24  ;;  %v1624_v54 = vadd.f32 %v1623_v23, %v1611_v38  ;;  %v3578_v16 = vor.u32 %v3931_v55, %v3575_v13  ;;  %v3951_v13 = vld [vmem:[#allocation10 + $0x40] sm:$0xff] }
 0x15c   :  { %vm1736_vm11 = vmor %vm1734_vm10, %vm1735_vm9 }
 0x15d   :  { %v1731_v31 = vsub.f32 1.0, %v1730_v28 }
 0x15e   :  { %2252 = vmatpush.bf16.msrb.mxu0 %v3586_v12  ;;  %v3952_v12 = vld [vmem:[#allocation10 + $0x48] sm:$0xff] }
 0x15f   :  { %v1732_v37 = vmul.f32 %v3988_v24, %v1731_v31 }
 0x161   :  { %v1662_v42 = vpop.f32.mrf.mxu0  ;;  %v1733_v43 = vadd.f32 %v3988_v24, %v1732_v37 }
 0x162   :  { %v1636_v36 = vpop.f32.mrf.mxu3  ;;  %v1625_v41 = vpop.f32.mrf.mxu1  ;;  %2253 = vmatpush.bf16.msrb.mxu0 %v3578_v16 }
 0x163   :  { %v1737_v4 = vsel %vm1736_vm11, %v3988_v24, %v1733_v43  ;;  %v1637_v60 = vadd.f32 %v1636_v36, %v1624_v54  ;;  %v3562_v24 = vor.u32 %v3927_v21, %v3559_v22  ;;  %v3949_v54 = vld [vmem:[#allocation10 + $0x30] sm:$0xff] }
 0x164   :  { %v1742_v52 = vsel %vm1739_vm12, %v1741_v33, %v1737_v4 }
 0x165   :  { %v1649_v57 = vpop.f32.mrf.mxu2  ;;  %1761 = vst [vmem:[#allocation12 + $0x10] sm:$0xff] %v1742_v52  ;;  %v1765_v49 = vpack.c.bf16 %v1742_v52, %v1742_v52 }
 0x166   :  { %v1650_v50 = vadd.f32 %v1649_v57, %v1637_v60  ;;  %2254 = vmatpush.bf16.msrb.mxu0 %v3570_v20  ;;  %v1831_v57 = vld [vmem:[%s4479_s4] sm:$0x3]  ;;  %s2538_s4 = sshll.u32 %s4299_s5, 4  ;;  %s2539_s4 = int_to_ptr.vmem [resolvable:$true] %s2538_s4 }
 0x167   :  { %2191 = vmatmul.bf16.vlgmr.msra.gmra.mxu2 %v1765_v49  ;;  %v1834_v4 = vperm.slane %v1831_v57, 1 }
 0x168   :  { %v1663_v6 = vadd.f32 %v1662_v42, %v1650_v50  ;;  %v1833_v42 = vperm.slane %v1831_v57, 0 }
 0x169   :  { %v1664_v62 = vpop.f32.mrf.mxu0 }
 0x16a   :  { %v1638_v56 = vpop.f32.mrf.mxu3  ;;  %2255 = vmatpush.bf16.msrb.mxu0 %v3562_v24  ;;  %v3945_v62 = vld [vmem:[#allocation10 + $0x10] sm:$0xff] }
 0x16d   :  { %v1651_v35 = vpop.f32.mrf.mxu2 }
 0x16e   :  { %v3958_v35 = vld [vmem:[#allocation10 + $0x78] sm:$0xff] }
 0x16f   :  { %2450 = vmatpush.bf16.msra.mxu1 %v3958_v35 }
 0x173   :  { %2451 = vmatpush.bf16.msra.mxu1 %v3957_v63 }
 0x175   :  { %v1675_v7 = vpop.f32.mrf.mxu2 }
 0x176   :  { %v1676_v8 = vadd.f32 %v1675_v7, %v1663_v6 }
 0x177   :  { %2243 = vmatmul.bf16.vlgmr.msrb.gmra.mxu2 %v1765_v49  ;;  %v3950_v49 = vld [vmem:[#allocation10 + $0x38] sm:$0xff]  ;;  %2452 = vmatpush.bf16.msra.mxu1 %v3956_v1 }
 0x178   :  { %1682 = vst [vmem:[#allocation11 + $0x18] sm:$0xff] %v1676_v8  ;;  %v1686_v11 = vsub.f32 0.0, %v1676_v8  ;;  %2437 = vmatpush.bf16.msra.mxu3 %v3950_v49  ;;  %v3954_v8 = vld [vmem:[#allocation10 + $0x58] sm:$0xff] }
 0x179   :  { %2488 = dma.vmem_to_hbm [thread:$0]  %s2484_s24, 512, %s2486_s8, [#allocation4]  }
 0x17a   :  { %v1693_v15 = vmul.f32 1.442695, %v1686_v11 }
 0x17b   :  { %2453 = vmatpush.bf16.msra.mxu1 %v3955_v3 }
 0x17c   :  { %3989 = vpow2.f32 %v1693_v15  ;;  %2438 = vmatpush.bf16.msra.mxu3 %v3949_v54 }
 0x17d   :  { %v1677_v19 = vpop.f32.mrf.mxu2 }
 0x17f   :  { %2454 = vmatpush.bf16.msra.mxu1 %v3954_v8 }
 0x180   :  { %2439 = vmatpush.bf16.msra.mxu3 %v3948_v58 }
 0x182   :  { %v3990_v45 = vpop.eup %3989 }
 0x183   :  { %v1698_v23 = vadd.f32 1.0, %v3990_v45  ;;  %2455 = vmatpush.bf16.msra.mxu1 %v3953_v10 }
 0x184   :  { %2440 = vmatpush.bf16.msra.mxu3 %v3947_v59 }
 0x185   :  { %3991 = vrcp.f32 %v1698_v23  ;;  %v1755_v14 = vand.u32 2147483648, %v1698_v23  ;;  %v1753_v31 = vand.u32 2147483647, %v1698_v23  ;;  %vm1749_vm14 = vweird.f32 %v1698_v23 }
 0x187   :  { %v1756_v27 = vor.u32 1.1754944e-38, %v1755_v14  ;;  %vm1754_vm0 = vcmp.eq.f32.partialorder %v1753_v31, 8.507059e+37  ;;  %2456 = vmatpush.bf16.msra.mxu1 %v3952_v12 }
 0x188   :  { %v2166_v32 = vpop.f32.mrf.mxu3  ;;  %2441 = vmatpush.bf16.msra.mxu3 %v3946_v61 }
 0x189   :  { %v2167_v43 = vadd.f32 %v2166_v32, %v1833_v42 }
 0x18b   :  { %v3992_v25 = vpop.eup %3991  ;;  %2457 = vmatpush.bf16.msra.mxu1 %v3951_v13 }
 0x18c   :  { %v1745_v26 = vmul.f32 %v3992_v25, %v1698_v23  ;;  %vm1750_vm13 = vweird.f32 %v3992_v25  ;;  %2442 = vmatpush.bf16.msra.mxu3 %v3945_v62 }
 0x18d   :  { %vm1751_vm15 = vmor %vm1749_vm14, %vm1750_vm13 }
 0x18e   :  { %v1746_v28 = vsub.f32 1.0, %v1745_v26 }
 0x190   :  { %v1747_v29 = vmul.f32 %v3992_v25, %v1746_v28  ;;  %v2168_v39 = vpop.f32.mrf.mxu3  ;;  %2443 = vmatpush.bf16.msra.mxu3 %v3944_v0 }
 0x192   :  { %v1748_v34 = vadd.f32 %v3992_v25, %v1747_v29 }
 0x194   :  { %v1752_v36 = vsel %vm1751_vm15, %v3992_v25, %v1748_v34  ;;  %2444 = vmatpush.bf16.msra.mxu3 %v3943_v2 }
 0x195   :  { %v1757_v37 = vsel %vm1754_vm0, %v1756_v27, %v1752_v36 }
 0x196   :  { %1762 = vst [vmem:[#allocation12 + $0x18] sm:$0xff] %v1757_v37  ;;  %v1766_v51 = vpack.c.bf16 %v1757_v37, %v1757_v37 }
 0x197   :  { %2499 = dma.vmem_to_hbm [thread:$0]  %s2495_s17, 512, %s2497_s16, [#allocation13]  }
 0x198   :  { %2204 = vmatmul.bf16.vlgmr.msra.gmra.mxu0 %v1766_v51 }
 0x1a2   :  { %v2218_v40 = vpop.f32.mrf.mxu3 }
 0x1a3   :  { %v2219_v30 = vadd.f32 %v2218_v40, %v1834_v4  ;;  %v2464_v4 = vlaneseq }
 0x1a8   :  { %2256 = vmatmul.bf16.vlgmr.msrb.gmra.mxu0 %v1766_v51 }
 0x1a9   :  { %v2179_v33 = vpop.f32.mrf.mxu1 }
 0x1aa   :  { %v2220_v41 = vpop.f32.mrf.mxu3  ;;  %v2180_v44 = vadd.f32 %v2179_v33, %v2167_v43 }
 0x1b1   :  { %v2181_v46 = vpop.f32.mrf.mxu1 }
 0x1b9   :  { %v2231_v47 = vpop.f32.mrf.mxu1 }
 0x1ba   :  { %v2232_v48 = vadd.f32 %v2231_v47, %v2219_v30  ;;  %v3976_v30 = vld [vmem:[%s4481_s6] ss:$0 sm:$0xff]  ;;  %v2465_v47 = vand.u32 127, %v2464_v4  ;;  %s4295_s6 = smov [#allocation15]  }
 0x1bb   :  { %s2516_s18 = sshll.u32 %s4295_s6, 4  ;;  %s2517_s18 = int_to_ptr.vmem [resolvable:$true] %s2516_s18 }
 0x1bc   :  { %vm2466_vm9 = vcmp.lt.s32.totalorder %v2465_v47, 10 }
 0x1c1   :  { %v2233_v38 = vpop.f32.mrf.mxu1 }
 0x1ea   :  { %v2192_v52 = vpop.f32.mrf.mxu2 }
 0x1eb   :  { %v2193_v50 = vadd.f32 %v2192_v52, %v2180_v44 }
 0x1f2   :  { %v2194_v53 = vpop.f32.mrf.mxu2 }
 0x1fa   :  { %v2244_v56 = vpop.f32.mrf.mxu2 }
 0x1fb   :  { %v2245_v16 = vadd.f32 %v2244_v56, %v2232_v48 }
 0x202   :  { %v2246_v60 = vpop.f32.mrf.mxu2 }
 0x215   :  { %v2205_v5 = vpop.f32.mrf.mxu0 }
 0x216   :  { %v2206_v6 = vadd.f32 %v2205_v5, %v2193_v50 }
 0x218   :  { %2261 = vst [vmem:[#allocation14] sm:$0xff] %v2206_v6  ;;  %v2263_v7 = vsub.f32 0.0, %v2206_v6 }
 0x21a   :  { %v2265_v9 = vmul.f32 1.442695, %v2263_v7 }
 0x21c   :  { %3993 = vpow2.f32 %v2265_v9 }
 0x21d   :  { %v2207_v11 = vpop.f32.mrf.mxu0 }
 0x222   :  { %v3994_v55 = vpop.eup %3993 }
 0x223   :  { %v2269_v15 = vadd.f32 1.0, %v3994_v55 }
 0x225   :  { %3995 = vrcp.f32 %v2269_v15  ;;  %v2257_v17 = vpop.f32.mrf.mxu0  ;;  %v2282_v24 = vand.u32 2147483648, %v2269_v15  ;;  %v2280_v26 = vand.u32 2147483647, %v2269_v15  ;;  %vm2276_vm2 = vweird.f32 %v2269_v15 }
 0x226   :  { %v2258_v18 = vadd.f32 %v2257_v17, %v2245_v16 }
 0x227   :  { %v2283_v31 = vor.u32 1.1754944e-38, %v2282_v24  ;;  %vm2281_vm4 = vcmp.eq.f32.partialorder %v2280_v26, 8.507059e+37 }
 0x228   :  { %2262 = vst [vmem:[#allocation14 + $0x8] sm:$0xff] %v2258_v18  ;;  %v2264_v19 = vsub.f32 0.0, %v2258_v18 }
 0x229   :  { %2510 = dma.vmem_to_hbm [thread:$0]  %s2506_s26, 256, %s2508_s10, [#allocation13]  }
 0x22a   :  { %v2267_v20 = vmul.f32 1.442695, %v2264_v19 }
 0x22b   :  { %v3996_v45 = vpop.eup %3995 }
 0x22c   :  { %v2272_v21 = vmul.f32 %v3996_v45, %v2269_v15  ;;  %3997 = vpow2.f32 %v2267_v20  ;;  %vm2277_vm1 = vweird.f32 %v3996_v45 }
 0x22d   :  { %v2259_v22 = vpop.f32.mrf.mxu0  ;;  %vm2278_vm3 = vmor %vm2276_vm2, %vm2277_vm1 }
 0x22e   :  { %v2273_v23 = vsub.f32 1.0, %v2272_v21 }
 0x230   :  { %v2274_v25 = vmul.f32 %v3996_v45, %v2273_v23 }
 0x232   :  { %v3998_v28 = vpop.eup %3997  ;;  %v2275_v14 = vadd.f32 %v3996_v45, %v2274_v25 }
 0x233   :  { %v2270_v29 = vadd.f32 1.0, %v3998_v28 }
 0x234   :  { %v2279_v32 = vsel %vm2278_vm3, %v3996_v45, %v2275_v14 }
 0x235   :  { %3999 = vrcp.f32 %v2270_v29  ;;  %v2284_v34 = vsel %vm2281_vm4, %v2283_v31, %v2279_v32  ;;  %v2297_v39 = vand.u32 2147483648, %v2270_v29  ;;  %v2295_v41 = vand.u32 2147483647, %v2270_v29 }
 0x236   :  { %v2303_v27 = vpack.c.bf16 %v2284_v34, %v2284_v34  ;;  %2301 = vst [vmem:[#allocation15] sm:$0xff] %v2284_v34  ;;  %vm2291_vm6 = vweird.f32 %v2270_v29 }
 0x237   :  { %v2298_v42 = vor.u32 1.1754944e-38, %v2297_v39  ;;  %vm2296_vm8 = vcmp.eq.f32.partialorder %v2295_v41, 8.507059e+37 }
 0x238   :  { %2445 = vmatmul.bf16.vlgmr.msra.gmra.mxu3 %v2303_v27 }
 0x23b   :  { %v4000_v36 = vpop.eup %3999 }
 0x23c   :  { %v2287_v37 = vmul.f32 %v4000_v36, %v2270_v29  ;;  %vm2292_vm5 = vweird.f32 %v4000_v36 }
 0x23d   :  { %vm2293_vm7 = vmor %vm2291_vm6, %vm2292_vm5 }
 0x23e   :  { %v2288_v51 = vsub.f32 1.0, %v2287_v37 }
 0x240   :  { %v2289_v40 = vmul.f32 %v4000_v36, %v2288_v51 }
 0x242   :  { %v2290_v57 = vadd.f32 %v4000_v36, %v2289_v40 }
 0x244   :  { %v2294_v43 = vsel %vm2293_vm7, %v4000_v36, %v2290_v57 }
 0x245   :  { %v2299_v33 = vsel %vm2296_vm8, %v2298_v42, %v2294_v43 }
 0x246   :  { %v2304_v44 = vpack.c.bf16 %v2299_v33, %v2299_v33  ;;  %2302 = vst [vmem:[#allocation15 + $0x8] sm:$0xff] %v2299_v33 }
 0x247   :  { %2521 = dma.vmem_to_hbm [thread:$0]  %s2517_s18, 256, %s2519_s21, [#allocation16]  }
 0x248   :  { %2458 = vmatmul.bf16.vlgmr.msra.gmra.mxu1 %v2304_v44 }
 0x2bb   :  { %v2446_v46 = vpop.f32.mrf.mxu3 }
 0x2bc   :  { %v2447_v38 = vadd.f32 %v3976_v30, %v2446_v46 }
 0x2c3   :  { %v2448_v48 = vpop.f32.mrf.mxu3 }
 0x2c5   :  { %v2459_v52 = vpop.f32.mrf.mxu1 }
 0x2c6   :  { %v2460_v53 = vadd.f32 %v2459_v52, %v2447_v38 }
 0x2c8   :  { %2463 = vst [vmem:[#allocation17] sm:$0xff] %v2460_v53  ;;  %v2467_v49 = vsel %vm2466_vm9, %v2460_v53, -1e+30 }
 0x2c9   :  { %2468 = vmax.xlane.f32.xlu0 %v2467_v49  ;;  %2532 = dma.vmem_to_hbm [thread:$0]  %s2528_s2, 128, %s2530_s7, [#allocation16]  }
 0x2cd   :  { %v2461_v54 = vpop.f32.mrf.mxu1 }
 0x33c   :  { %v2469_v56 = vpop.xlane.xlu0 %2468 }
 0x33d   :  { %v2470_v58 = vsub.f32 %v2467_v49, %v2469_v56 }
 0x33f   :  { %v2471_v59 = vmul.f32 1.442695, %v2470_v58 }
 0x341   :  { %4001 = vpow2.f32 %v2471_v59 }
 0x347   :  { %v4002_v60 = vpop.eup %4001 }
 0x348   :  { %2473 = vadd.xlane.f32.xlu0 %v4002_v60 }
 0x3bb   :  { %v2474_v61 = vpop.xlane.xlu0 %2473 }
 0x3bc   :  { %4003 = vrcp.f32 %v2474_v61 }
 0x3c2   :  { %v4004_v35 = vpop.eup %4003 }
 0x3c3   :  { %v2476_v62 = vmul.f32 %v4004_v35, %v4002_v60 }
 0x3c5   :  { %2477 = vst [vmem:[#allocation18] sm:$0xff] %v2476_v62 }
 0x3c6   :  { %2543 = dma.vmem_to_hbm [thread:$0]  %s2539_s4, 128, %s2541_s9, [#allocation19]  }
 0x3c7   :  { %4275 = dma.done.wait [#allocation4], 512  }
 0x3c8   :  { %4276 = vsyncadd [#allocation4], 4294966784 }
 0x3c9   :  { %4277 = dma.done.wait [#allocation13], 768  }
 0x3ca   :  { %4278 = vsyncadd [#allocation13], 4294966528 }
 0x3cb   :  { %4279 = dma.done.wait [#allocation16], 384  }
 0x3cc   :  { %4280 = vsyncadd [#allocation16], 4294966912 }
 0x3cd   :  { %4281 = dma.done.wait [#allocation19], 128  }
 0x3ce   :  { %4282 = vsyncadd [#allocation19], 4294967168 }
 0x3cf   :  { %2568 = vsyncpa [#allocation3], 1 }
 0x3d0   :  { %2569 = vsyncpa [#allocation6], 1 }
 0x3d1   :  { %2570 = vsyncpa [#allocation9], 1 }
 0x3d2   :  { %2571 = vsyncpa [#allocation4], 1 }
 0x3d3   :  { %2572 = vsyncpa [#allocation13], 1 }
 0x3d4   :  { %2573 = vsyncpa [#allocation16], 1 }
 0x3d5   :  { %2574 = vsyncpa [#allocation19], 1 }

</bundles_post_ra>
